<compile_context>
chip_gen: v7x
topology: tpu7x:2x2x1
jax: 0.10.0
libtpu: 0.0.40
codegen_flags: <defaults>
</compile_context>

<pallas_src>
from functools import partial

import numpy as np
import jax
import jax.numpy as jnp
from jax.experimental import pallas as pl
from jax.experimental.pallas import tpu as pltpu


def encoder_block_kernel(x_ref, wqkv_ref, bqkv_ref, wo_ref, w1_ref, w2_ref,
                         b1_ref, vec_ref, o_ref, *, num_heads, eps):
    B, S, E = x_ref.shape
    H = num_heads
    hd = E // H
    R = B * S

    # Packed bias / LayerNorm vectors (rows of the (8, E) slab).
    bo = vec_ref[0:1]      # (1, E) out-proj bias
    g1 = vec_ref[1:2]      # LN1 weight
    be1 = vec_ref[2:3]     # LN1 bias
    b2 = vec_ref[3:4]      # FFN second-linear bias
    g2 = vec_ref[4:5]      # LN2 weight
    be2 = vec_ref[5:6]     # LN2 bias

    x = x_ref[...].reshape(R, E)                       # (B*S, E) f32
    xb = x.astype(jnp.bfloat16)

    # --- packed Q/K/V projection: one MXU pass, M=R, K=E, N=3E ---
    qkv = jnp.dot(xb, wqkv_ref[...],
                  preferred_element_type=jnp.float32) + bqkv_ref[...]   # (R, 3E)
    q = qkv[:, :E]          # 1/sqrt(hd) already folded into Wq / bq
    k = qkv[:, E:2 * E]
    v = qkv[:, 2 * E:]

    def split_heads(t):
        # (R, E) -> (H*B, S, hd) with batch index n = h*B + b.
        # Lane slices + major-axis concat only (no transposes).
        parts = [t[:, h * hd:(h + 1) * hd].reshape(B, S, hd) for h in range(H)]
        return jnp.concatenate(parts, axis=0)

    qh = split_heads(q).astype(jnp.bfloat16)           # (H*B, S, hd)
    kh = split_heads(k).astype(jnp.bfloat16)
    vh = split_heads(v).astype(jnp.bfloat16)

    # --- scaled dot-product attention, batched over (head, batch) ---
    s = jnp.einsum("nqd,nkd->nqk", qh, kh,
                   preferred_element_type=jnp.float32)                  # (H*B,S,S)
    s = s - jnp.max(s, axis=-1, keepdims=True)
    p = jnp.exp(s)
    p = p / jnp.sum(p, axis=-1, keepdims=True)          # exact softmax

    ctx = jnp.einsum("nqk,nkd->nqd", p.astype(jnp.bfloat16), vh,
                     preferred_element_type=jnp.float32)                # (H*B,S,hd)

    # --- merge heads back to lane-packed (R, E) and apply out-projection ---
    ctx_cat = jnp.concatenate(
        [ctx[h * B:(h + 1) * B].reshape(R, hd) for h in range(H)], axis=-1)
    attn_out = jnp.dot(ctx_cat.astype(jnp.bfloat16), wo_ref[...],
                       preferred_element_type=jnp.float32) + bo         # (R, E)

    # --- residual + LayerNorm1 (f32) ---  (dropout p=0.0 -> identity)
    x1 = x + attn_out
    mu = jnp.mean(x1, axis=-1, keepdims=True)
    var = jnp.mean(jnp.square(x1 - mu), axis=-1, keepdims=True)
    x1n = (x1 - mu) * jax.lax.rsqrt(var + eps) * g1 + be1

    # --- feedforward: Linear -> (Dropout p=0) -> ReLU -> Linear ---
    hmid = jnp.dot(x1n.astype(jnp.bfloat16), w1_ref[...],
                   preferred_element_type=jnp.float32) + b1_ref[...]    # (R, F)
    hmid = jnp.maximum(hmid, 0.0)
    ff = jnp.dot(hmid.astype(jnp.bfloat16), w2_ref[...],
                 preferred_element_type=jnp.float32) + b2               # (R, E)

    # --- residual + LayerNorm2 (f32) ---
    x2 = x1n + ff
    mu2 = jnp.mean(x2, axis=-1, keepdims=True)
    var2 = jnp.mean(jnp.square(x2 - mu2), axis=-1, keepdims=True)
    out = (x2 - mu2) * jax.lax.rsqrt(var2 + eps) * g2 + be2

    o_ref[...] = out.reshape(B, S, E)


def encoder_block(x, kparams, *, num_heads, eps=1e-5):
    """x: (B, S, E) float32. kparams: output of prepare_params()."""
    B, S, E = x.shape
    kernel = partial(encoder_block_kernel, num_heads=num_heads, eps=eps)
    # Whole problem fits a single grid step: every operand is mapped
    # whole-array into VMEM (no per-step pipelining / double-buffering).
    return pl.pallas_call(
        kernel,
        out_shape=jax.ShapeDtypeStruct((B, S, E), jnp.float32),
        compiler_params=pltpu.CompilerParams(
            vmem_limit_bytes=32 * 1024 * 1024,
        ),
    )(x, kparams["w_qkv"], kparams["b_qkv"], kparams["wo"],
      kparams["w1"], kparams["w2"], kparams["b1"], kparams["vecs"])


def init_params(key, input_dim, num_heads, dim_feedforward):
    """Deterministic synthetic params in PyTorch layout (matching module shapes)."""
    E, F = input_dim, dim_feedforward
    ks = jax.random.split(key, 6)
    s = 0.05
    return {
        "w_in":  s * jax.random.normal(ks[0], (3 * E, E), jnp.float32),
        "b_in":  s * jax.random.normal(ks[1], (3 * E,), jnp.float32),
        "w_out": s * jax.random.normal(ks[2], (E, E), jnp.float32),
        "b_out": s * jax.random.normal(ks[3], (E,), jnp.float32),
        "ln1_w": jnp.ones((E,), jnp.float32),
        "ln1_b": jnp.zeros((E,), jnp.float32),
        "ff_w1": s * jax.random.normal(ks[4], (F, E), jnp.float32),
        "ff_b1": jnp.zeros((F,), jnp.float32),
        "ff_w2": s * jax.random.normal(ks[5], (E, F), jnp.float32),
        "ff_b2": jnp.zeros((E,), jnp.float32),
        "ln2_w": jnp.ones((E,), jnp.float32),
        "ln2_b": jnp.zeros((E,), jnp.float32),
    }


def prepare_params(params, *, num_heads):
    """One-time host-side re-layout:
      * pre-transpose all matmul weights, cast them to bf16,
      * pack Wq/Wk/Wv into one (E, 3E) slab and fold 1/sqrt(head_dim) into
        the Q weights + bias,
      * pack the six E-length bias/LayerNorm vectors into one (8, E) slab."""
    E = params["w_out"].shape[0]
    F = params["ff_w1"].shape[0]
    hd = E // num_heads
    scale = 1.0 / float(hd) ** 0.5

    w_in, b_in = params["w_in"], params["b_in"]
    w_in_scaled = jnp.concatenate([w_in[:E] * scale, w_in[E:]], axis=0)   # (3E, E)
    b_in_scaled = jnp.concatenate([b_in[:E] * scale, b_in[E:]], axis=0)   # (3E,)

    zeros = jnp.zeros((E,), jnp.float32)
    vecs = jnp.stack(
        [params["b_out"], params["ln1_w"], params["ln1_b"],
         params["ff_b2"], params["ln2_w"], params["ln2_b"], zeros, zeros],
        axis=0).astype(jnp.float32)                                       # (8, E)

    return {
        "w_qkv": w_in_scaled.T.astype(jnp.bfloat16),            # (E, 3E)
        "b_qkv": b_in_scaled.reshape(1, 3 * E).astype(jnp.float32),
        "wo": params["w_out"].T.astype(jnp.bfloat16),            # (E, E)
        "w1": params["ff_w1"].T.astype(jnp.bfloat16),            # (E, F)
        "b1": params["ff_b1"].reshape(1, F).astype(jnp.float32),
        "w2": params["ff_w2"].T.astype(jnp.bfloat16),            # (F, E)
        "vecs": vecs,
    }


def encoder_block_ref(x, params, *, num_heads, eps=1e-5):
    """Pure-JAX f32 reference (PyTorch nn.MultiheadAttention / LayerNorm semantics)."""
    B, S, E = x.shape
    hd = E // num_heads
    qkv = x @ params["w_in"].T + params["b_in"]
    q, k, v = qkv[..., :E], qkv[..., E:2 * E], qkv[..., 2 * E:]

    def split(t):  # (B, S, E) -> (B, H, S, hd)
        return t.reshape(B, S, num_heads, hd).transpose(0, 2, 1, 3)

    qh, kh, vh = split(q), split(k), split(v)
    scores = jnp.einsum("bhqd,bhkd->bhqk", qh, kh) / (hd ** 0.5)
    p = jax.nn.softmax(scores, axis=-1)
    o = jnp.einsum("bhqk,bhkd->bhqd", p, vh).transpose(0, 2, 1, 3).reshape(B, S, E)
    attn_out = o @ params["w_out"].T + params["b_out"]

    def ln(t, w, b):
        mu = jnp.mean(t, -1, keepdims=True)
        var = jnp.mean((t - mu) ** 2, -1, keepdims=True)
        return (t - mu) * jax.lax.rsqrt(var + eps) * w + b

    x1 = ln(x + attn_out, params["ln1_w"], params["ln1_b"])
    h = jnp.maximum(x1 @ params["ff_w1"].T + params["ff_b1"], 0.0)
    ff = h @ params["ff_w2"].T + params["ff_b2"]
    return ln(x1 + ff, params["ln2_w"], params["ln2_b"])


if __name__ == "__main__":
    # Small, lane/sublane-aligned shapes: E = 128 (one full lane tile),
    # B*S = 32 rows fed to every row-wise matmul, F = 256.
    B, S, E = 4, 8, 128
    num_heads = 4
    dim_feedforward = 2 * E          # module default: input_dim * 2

    key = jax.random.PRNGKey(0)
    kx, kp = jax.random.split(key)
    x = jax.random.normal(kx, (B, S, E), jnp.float32)
    params = init_params(kp, E, num_heads, dim_feedforward)
    kparams = prepare_params(params, num_heads=num_heads)

    out = encoder_block(x, kparams, num_heads=num_heads)
    out = jax.block_until_ready(out)

    ref = encoder_block_ref(x, params, num_heads=num_heads)
    # bf16 MXU operands -> loosened tolerance vs. the pure-f32 reference.
    np.testing.assert_allclose(np.asarray(out), np.asarray(ref), rtol=5e-2, atol=5e-2)

    print("KERNEL_OK")
</pallas_src>

<mosaic_0001>
module attributes {stable_mosaic.version = 11 : i64} {
  func.func @encoder_block_kernel(%arg0: memref<4x8x128xf32, #tpu.memory_space<vmem>>, %arg1: memref<128x384xbf16, #tpu.memory_space<vmem>>, %arg2: memref<1x384xf32, #tpu.memory_space<vmem>>, %arg3: memref<128x128xbf16, #tpu.memory_space<vmem>>, %arg4: memref<128x256xbf16, #tpu.memory_space<vmem>>, %arg5: memref<256x128xbf16, #tpu.memory_space<vmem>>, %arg6: memref<1x256xf32, #tpu.memory_space<vmem>>, %arg7: memref<8x128xf32, #tpu.memory_space<vmem>>, %arg8: memref<4x8x128xf32, #tpu.memory_space<vmem>>) attributes {dimension_semantics = [], scalar_prefetch = 0 : i64, scratch_operands = 0 : i64, tpu.core_type = #tpu.core_type<tc>} {
    %c0 = arith.constant 0 : index
    %c0_0 = arith.constant 0 : index
    %0 = vector.load %arg7[%c0, %c0_0] : memref<8x128xf32, #tpu.memory_space<vmem>>, vector<1x128xf32>
    %c1 = arith.constant 1 : index
    %c0_1 = arith.constant 0 : index
    %1 = vector.load %arg7[%c1, %c0_1] : memref<8x128xf32, #tpu.memory_space<vmem>>, vector<1x128xf32>
    %c2 = arith.constant 2 : index
    %c0_2 = arith.constant 0 : index
    %2 = vector.load %arg7[%c2, %c0_2] : memref<8x128xf32, #tpu.memory_space<vmem>>, vector<1x128xf32>
    %c3 = arith.constant 3 : index
    %c0_3 = arith.constant 0 : index
    %3 = vector.load %arg7[%c3, %c0_3] : memref<8x128xf32, #tpu.memory_space<vmem>>, vector<1x128xf32>
    %c4 = arith.constant 4 : index
    %c0_4 = arith.constant 0 : index
    %4 = vector.load %arg7[%c4, %c0_4] : memref<8x128xf32, #tpu.memory_space<vmem>>, vector<1x128xf32>
    %c5 = arith.constant 5 : index
    %c0_5 = arith.constant 0 : index
    %5 = vector.load %arg7[%c5, %c0_5] : memref<8x128xf32, #tpu.memory_space<vmem>>, vector<1x128xf32>
    %c0_6 = arith.constant 0 : index
    %c0_7 = arith.constant 0 : index
    %c0_8 = arith.constant 0 : index
    %6 = vector.load %arg0[%c0_6, %c0_7, %c0_8] : memref<4x8x128xf32, #tpu.memory_space<vmem>>, vector<4x8x128xf32>
    %7 = vector.shape_cast %6 : vector<4x8x128xf32> to vector<32x128xf32>
    %8 = arith.truncf %7 : vector<32x128xf32> to vector<32x128xbf16>
    %c0_9 = arith.constant 0 : index
    %c0_10 = arith.constant 0 : index
    %9 = vector.load %arg1[%c0_9, %c0_10] : memref<128x384xbf16, #tpu.memory_space<vmem>>, vector<128x384xbf16>
    %cst = arith.constant dense<0.000000e+00> : vector<32x384xf32>
    %10 = tpu.matmul %8, %9, %cst {dimension_numbers = #tpu.dot_dimension_numbers<[1], [0], [0], [1], [0, 0, 1, 1], [], []>} : vector<32x128xbf16>, vector<128x384xbf16>, vector<32x384xf32> -> vector<32x384xf32>
    %c0_11 = arith.constant 0 : index
    %c0_12 = arith.constant 0 : index
    %11 = vector.load %arg2[%c0_11, %c0_12] : memref<1x384xf32, #tpu.memory_space<vmem>>, vector<1x384xf32>
    %12 = vector.broadcast %11 : vector<1x384xf32> to vector<32x384xf32>
    %13 = arith.addf %10, %12 : vector<32x384xf32>
    %14 = vector.extract_strided_slice %13 {offsets = [0, 0], sizes = [32, 128], strides = [1, 1]} : vector<32x384xf32> to vector<32x128xf32>
    %15 = vector.extract_strided_slice %13 {offsets = [0, 128], sizes = [32, 128], strides = [1, 1]} : vector<32x384xf32> to vector<32x128xf32>
    %16 = vector.extract_strided_slice %13 {offsets = [0, 256], sizes = [32, 128], strides = [1, 1]} : vector<32x384xf32> to vector<32x128xf32>
    %17 = vector.extract_strided_slice %14 {offsets = [0, 0], sizes = [32, 32], strides = [1, 1]} : vector<32x128xf32> to vector<32x32xf32>
    %18 = vector.shape_cast %17 : vector<32x32xf32> to vector<4x8x32xf32>
    %19 = vector.extract_strided_slice %14 {offsets = [0, 32], sizes = [32, 32], strides = [1, 1]} : vector<32x128xf32> to vector<32x32xf32>
    %20 = vector.shape_cast %19 : vector<32x32xf32> to vector<4x8x32xf32>
    %21 = vector.extract_strided_slice %14 {offsets = [0, 64], sizes = [32, 32], strides = [1, 1]} : vector<32x128xf32> to vector<32x32xf32>
    %22 = vector.shape_cast %21 : vector<32x32xf32> to vector<4x8x32xf32>
    %23 = vector.extract_strided_slice %14 {offsets = [0, 96], sizes = [32, 32], strides = [1, 1]} : vector<32x128xf32> to vector<32x32xf32>
    %24 = vector.shape_cast %23 : vector<32x32xf32> to vector<4x8x32xf32>
    %25 = tpu.concatenate %18, %20, %22, %24 in 0 : vector<4x8x32xf32>, vector<4x8x32xf32>, vector<4x8x32xf32>, vector<4x8x32xf32> -> vector<16x8x32xf32>
    %26 = arith.truncf %25 : vector<16x8x32xf32> to vector<16x8x32xbf16>
    %27 = vector.extract_strided_slice %15 {offsets = [0, 0], sizes = [32, 32], strides = [1, 1]} : vector<32x128xf32> to vector<32x32xf32>
    %28 = vector.shape_cast %27 : vector<32x32xf32> to vector<4x8x32xf32>
    %29 = vector.extract_strided_slice %15 {offsets = [0, 32], sizes = [32, 32], strides = [1, 1]} : vector<32x128xf32> to vector<32x32xf32>
    %30 = vector.shape_cast %29 : vector<32x32xf32> to vector<4x8x32xf32>
    %31 = vector.extract_strided_slice %15 {offsets = [0, 64], sizes = [32, 32], strides = [1, 1]} : vector<32x128xf32> to vector<32x32xf32>
    %32 = vector.shape_cast %31 : vector<32x32xf32> to vector<4x8x32xf32>
    %33 = vector.extract_strided_slice %15 {offsets = [0, 96], sizes = [32, 32], strides = [1, 1]} : vector<32x128xf32> to vector<32x32xf32>
    %34 = vector.shape_cast %33 : vector<32x32xf32> to vector<4x8x32xf32>
    %35 = tpu.concatenate %28, %30, %32, %34 in 0 : vector<4x8x32xf32>, vector<4x8x32xf32>, vector<4x8x32xf32>, vector<4x8x32xf32> -> vector<16x8x32xf32>
    %36 = arith.truncf %35 : vector<16x8x32xf32> to vector<16x8x32xbf16>
    %37 = vector.extract_strided_slice %16 {offsets = [0, 0], sizes = [32, 32], strides = [1, 1]} : vector<32x128xf32> to vector<32x32xf32>
    %38 = vector.shape_cast %37 : vector<32x32xf32> to vector<4x8x32xf32>
    %39 = vector.extract_strided_slice %16 {offsets = [0, 32], sizes = [32, 32], strides = [1, 1]} : vector<32x128xf32> to vector<32x32xf32>
    %40 = vector.shape_cast %39 : vector<32x32xf32> to vector<4x8x32xf32>
    %41 = vector.extract_strided_slice %16 {offsets = [0, 64], sizes = [32, 32], strides = [1, 1]} : vector<32x128xf32> to vector<32x32xf32>
    %42 = vector.shape_cast %41 : vector<32x32xf32> to vector<4x8x32xf32>
    %43 = vector.extract_strided_slice %16 {offsets = [0, 96], sizes = [32, 32], strides = [1, 1]} : vector<32x128xf32> to vector<32x32xf32>
    %44 = vector.shape_cast %43 : vector<32x32xf32> to vector<4x8x32xf32>
    %45 = tpu.concatenate %38, %40, %42, %44 in 0 : vector<4x8x32xf32>, vector<4x8x32xf32>, vector<4x8x32xf32>, vector<4x8x32xf32> -> vector<16x8x32xf32>
    %46 = arith.truncf %45 : vector<16x8x32xf32> to vector<16x8x32xbf16>
    "tpu.trace_start"() <{level = 10 : i32, message = "nqd,nkd->nqk"}> : () -> ()
    %cst_13 = arith.constant dense<0.000000e+00> : vector<16x8x8xf32>
    %47 = tpu.matmul %26, %36, %cst_13 {dimension_numbers = #tpu.dot_dimension_numbers<[2], [2], [1], [1], [0, 0, 0, 1, 1, 1], [0], [0]>} : vector<16x8x32xbf16>, vector<16x8x32xbf16>, vector<16x8x8xf32> -> vector<16x8x8xf32>
    "tpu.trace_stop"() : () -> ()
    %cst_14 = arith.constant dense<0xFF800000> : vector<16x8xf32>
    %48 = vector.multi_reduction <maximumf>, %47, %cst_14 [2] : vector<16x8x8xf32> to vector<16x8xf32>
    %49 = vector.shape_cast %48 : vector<16x8xf32> to vector<16x8x1xf32>
    %50 = vector.broadcast %49 : vector<16x8x1xf32> to vector<16x8x8xf32>
    %51 = arith.subf %47, %50 : vector<16x8x8xf32>
    %52 = math.exp %51 : vector<16x8x8xf32>
    %cst_15 = arith.constant dense<0.000000e+00> : vector<16x8xf32>
    %53 = vector.multi_reduction <add>, %52, %cst_15 [2] : vector<16x8x8xf32> to vector<16x8xf32>
    %54 = vector.shape_cast %53 : vector<16x8xf32> to vector<16x8x1xf32>
    %55 = vector.broadcast %54 : vector<16x8x1xf32> to vector<16x8x8xf32>
    %56 = arith.divf %52, %55 : vector<16x8x8xf32>
    %57 = arith.truncf %56 : vector<16x8x8xf32> to vector<16x8x8xbf16>
    "tpu.trace_start"() <{level = 10 : i32, message = "nqk,nkd->nqd"}> : () -> ()
    %cst_16 = arith.constant dense<0.000000e+00> : vector<16x8x32xf32>
    %58 = tpu.matmul %57, %46, %cst_16 {dimension_numbers = #tpu.dot_dimension_numbers<[2], [1], [1], [2], [0, 0, 0, 1, 1, 2], [0], [0]>} : vector<16x8x8xbf16>, vector<16x8x32xbf16>, vector<16x8x32xf32> -> vector<16x8x32xf32>
    "tpu.trace_stop"() : () -> ()
    %59 = vector.extract_strided_slice %58 {offsets = [0, 0, 0], sizes = [4, 8, 32], strides = [1, 1, 1]} : vector<16x8x32xf32> to vector<4x8x32xf32>
    %60 = vector.shape_cast %59 : vector<4x8x32xf32> to vector<32x32xf32>
    %61 = vector.extract_strided_slice %58 {offsets = [4, 0, 0], sizes = [4, 8, 32], strides = [1, 1, 1]} : vector<16x8x32xf32> to vector<4x8x32xf32>
    %62 = vector.shape_cast %61 : vector<4x8x32xf32> to vector<32x32xf32>
    %63 = vector.extract_strided_slice %58 {offsets = [8, 0, 0], sizes = [4, 8, 32], strides = [1, 1, 1]} : vector<16x8x32xf32> to vector<4x8x32xf32>
    %64 = vector.shape_cast %63 : vector<4x8x32xf32> to vector<32x32xf32>
    %65 = vector.extract_strided_slice %58 {offsets = [12, 0, 0], sizes = [4, 8, 32], strides = [1, 1, 1]} : vector<16x8x32xf32> to vector<4x8x32xf32>
    %66 = vector.shape_cast %65 : vector<4x8x32xf32> to vector<32x32xf32>
    %67 = tpu.concatenate %60, %62, %64, %66 in 1 : vector<32x32xf32>, vector<32x32xf32>, vector<32x32xf32>, vector<32x32xf32> -> vector<32x128xf32>
    %68 = arith.truncf %67 : vector<32x128xf32> to vector<32x128xbf16>
    %c0_17 = arith.constant 0 : index
    %c0_18 = arith.constant 0 : index
    %69 = vector.load %arg3[%c0_17, %c0_18] : memref<128x128xbf16, #tpu.memory_space<vmem>>, vector<128x128xbf16>
    %cst_19 = arith.constant dense<0.000000e+00> : vector<32x128xf32>
    %70 = tpu.matmul %68, %69, %cst_19 {dimension_numbers = #tpu.dot_dimension_numbers<[1], [0], [0], [1], [0, 0, 1, 1], [], []>} : vector<32x128xbf16>, vector<128x128xbf16>, vector<32x128xf32> -> vector<32x128xf32>
    %71 = vector.broadcast %0 : vector<1x128xf32> to vector<32x128xf32>
    %72 = arith.addf %70, %71 : vector<32x128xf32>
    %73 = arith.addf %7, %72 : vector<32x128xf32>
    %cst_20 = arith.constant dense<0.000000e+00> : vector<32xf32>
    %74 = vector.multi_reduction <add>, %73, %cst_20 [1] : vector<32x128xf32> to vector<32xf32>
    %75 = vector.shape_cast %74 : vector<32xf32> to vector<32x1xf32>
    %cst_21 = arith.constant 1.280000e+02 : f32
    %76 = vector.broadcast %cst_21 : f32 to vector<32x1xf32>
    %77 = arith.divf %75, %76 : vector<32x1xf32>
    %78 = vector.broadcast %77 : vector<32x1xf32> to vector<32x128xf32>
    %79 = arith.subf %73, %78 : vector<32x128xf32>
    %80 = arith.mulf %79, %79 : vector<32x128xf32>
    %cst_22 = arith.constant dense<0.000000e+00> : vector<32xf32>
    %81 = vector.multi_reduction <add>, %80, %cst_22 [1] : vector<32x128xf32> to vector<32xf32>
    %82 = vector.shape_cast %81 : vector<32xf32> to vector<32x1xf32>
    %cst_23 = arith.constant 1.280000e+02 : f32
    %83 = vector.broadcast %cst_23 : f32 to vector<32x1xf32>
    %84 = arith.divf %82, %83 : vector<32x1xf32>
    %85 = vector.broadcast %77 : vector<32x1xf32> to vector<32x128xf32>
    %86 = arith.subf %73, %85 : vector<32x128xf32>
    %cst_24 = arith.constant 9.99999974E-6 : f32
    %87 = vector.broadcast %cst_24 : f32 to vector<32x1xf32>
    %88 = arith.addf %84, %87 : vector<32x1xf32>
    %89 = math.rsqrt %88 : vector<32x1xf32>
    %90 = vector.broadcast %89 : vector<32x1xf32> to vector<32x128xf32>
    %91 = arith.mulf %86, %90 : vector<32x128xf32>
    %92 = vector.broadcast %1 : vector<1x128xf32> to vector<32x128xf32>
    %93 = arith.mulf %91, %92 : vector<32x128xf32>
    %94 = vector.broadcast %2 : vector<1x128xf32> to vector<32x128xf32>
    %95 = arith.addf %93, %94 : vector<32x128xf32>
    %96 = arith.truncf %95 : vector<32x128xf32> to vector<32x128xbf16>
    %c0_25 = arith.constant 0 : index
    %c0_26 = arith.constant 0 : index
    %97 = vector.load %arg4[%c0_25, %c0_26] : memref<128x256xbf16, #tpu.memory_space<vmem>>, vector<128x256xbf16>
    %cst_27 = arith.constant dense<0.000000e+00> : vector<32x256xf32>
    %98 = tpu.matmul %96, %97, %cst_27 {dimension_numbers = #tpu.dot_dimension_numbers<[1], [0], [0], [1], [0, 0, 1, 1], [], []>} : vector<32x128xbf16>, vector<128x256xbf16>, vector<32x256xf32> -> vector<32x256xf32>
    %c0_28 = arith.constant 0 : index
    %c0_29 = arith.constant 0 : index
    %99 = vector.load %arg6[%c0_28, %c0_29] : memref<1x256xf32, #tpu.memory_space<vmem>>, vector<1x256xf32>
    %100 = vector.broadcast %99 : vector<1x256xf32> to vector<32x256xf32>
    %101 = arith.addf %98, %100 : vector<32x256xf32>
    %cst_30 = arith.constant 0.000000e+00 : f32
    %102 = vector.broadcast %cst_30 : f32 to vector<32x256xf32>
    %103 = arith.maximumf %101, %102 : vector<32x256xf32>
    %104 = arith.truncf %103 : vector<32x256xf32> to vector<32x256xbf16>
    %c0_31 = arith.constant 0 : index
    %c0_32 = arith.constant 0 : index
    %105 = vector.load %arg5[%c0_31, %c0_32] : memref<256x128xbf16, #tpu.memory_space<vmem>>, vector<256x128xbf16>
    %cst_33 = arith.constant dense<0.000000e+00> : vector<32x128xf32>
    %106 = tpu.matmul %104, %105, %cst_33 {dimension_numbers = #tpu.dot_dimension_numbers<[1], [0], [0], [1], [0, 0, 1, 1], [], []>} : vector<32x256xbf16>, vector<256x128xbf16>, vector<32x128xf32> -> vector<32x128xf32>
    %107 = vector.broadcast %3 : vector<1x128xf32> to vector<32x128xf32>
    %108 = arith.addf %106, %107 : vector<32x128xf32>
    %109 = arith.addf %95, %108 : vector<32x128xf32>
    %cst_34 = arith.constant dense<0.000000e+00> : vector<32xf32>
    %110 = vector.multi_reduction <add>, %109, %cst_34 [1] : vector<32x128xf32> to vector<32xf32>
    %111 = vector.shape_cast %110 : vector<32xf32> to vector<32x1xf32>
    %cst_35 = arith.constant 1.280000e+02 : f32
    %112 = vector.broadcast %cst_35 : f32 to vector<32x1xf32>
    %113 = arith.divf %111, %112 : vector<32x1xf32>
    %114 = vector.broadcast %113 : vector<32x1xf32> to vector<32x128xf32>
    %115 = arith.subf %109, %114 : vector<32x128xf32>
    %116 = arith.mulf %115, %115 : vector<32x128xf32>
    %cst_36 = arith.constant dense<0.000000e+00> : vector<32xf32>
    %117 = vector.multi_reduction <add>, %116, %cst_36 [1] : vector<32x128xf32> to vector<32xf32>
    %118 = vector.shape_cast %117 : vector<32xf32> to vector<32x1xf32>
    %cst_37 = arith.constant 1.280000e+02 : f32
    %119 = vector.broadcast %cst_37 : f32 to vector<32x1xf32>
    %120 = arith.divf %118, %119 : vector<32x1xf32>
    %121 = vector.broadcast %113 : vector<32x1xf32> to vector<32x128xf32>
    %122 = arith.subf %109, %121 : vector<32x128xf32>
    %cst_38 = arith.constant 9.99999974E-6 : f32
    %123 = vector.broadcast %cst_38 : f32 to vector<32x1xf32>
    %124 = arith.addf %120, %123 : vector<32x1xf32>
    %125 = math.rsqrt %124 : vector<32x1xf32>
    %126 = vector.broadcast %125 : vector<32x1xf32> to vector<32x128xf32>
    %127 = arith.mulf %122, %126 : vector<32x128xf32>
    %128 = vector.broadcast %4 : vector<1x128xf32> to vector<32x128xf32>
    %129 = arith.mulf %127, %128 : vector<32x128xf32>
    %130 = vector.broadcast %5 : vector<1x128xf32> to vector<32x128xf32>
    %131 = arith.addf %129, %130 : vector<32x128xf32>
    %132 = vector.shape_cast %131 : vector<32x128xf32> to vector<4x8x128xf32>
    %c0_39 = arith.constant 0 : index
    %c0_40 = arith.constant 0 : index
    %c0_41 = arith.constant 0 : index
    %133 = vector.load %arg8[%c0_39, %c0_40, %c0_41] : memref<4x8x128xf32, #tpu.memory_space<vmem>>, vector<4x8x128xf32>
    tpu.vector_store %arg8[%c0_39, %c0_40, %c0_41], %132 {strides = array<i32>} : memref<4x8x128xf32, #tpu.memory_space<vmem>>, vector<4x8x128xf32>,
    return
  }
}

</mosaic_0001>

<bundles_post_ra>
// kernel: tpu_custom_call.1
= control target key start
LH: loop header
LB: loop body
LE: loop exit
PB: predicated region body
PF: predicated region fallthrough
CT: control target
= control target key end

     0   :  { %13 = vsyncpa [#allocation3], 0  ;;  %s4448_s0 = inlined_call_operand.hbm [shape: f32[4,8,128], index: 0, kind: input, shape index: {}]   ;;  %s4449_s1 = inlined_call_operand.hbm [shape: bf16[128,384], index: 1, kind: input, shape index: {}]   ;;  %s4450_s2 = inlined_call_operand.vmem [shape: f32[1,384], index: 2, kind: input, shape index: {}]   ;;  %s4451_s3 = inlined_call_operand.hbm [shape: bf16[128,128], index: 3, kind: input, shape index: {}]   ;;  %s4452_s4 = inlined_call_operand.hbm [shape: bf16[128,256], index: 4, kind: input, shape index: {}]   ;;  %s4453_s5 = inlined_call_operand.hbm [shape: bf16[256,128], index: 5, kind: input, shape index: {}]   ;;  %s4454_s6 = inlined_call_operand.vmem [shape: f32[1,256], index: 6, kind: input, shape index: {}]   ;;  %s4455_s7 = inlined_call_operand.vmem [shape: f32[8,128], index: 7, kind: input, shape index: {}]   ;;  %s4456_s8 = inlined_call_operand.hbm [shape: f32[4,8,128], index: 8, kind: output, shape index: {}]  }
   0x1   :  { %14 = vsyncpa [#allocation6], 0 }
   0x2   :  { %15 = vsyncpa [#allocation9], 0 }
   0x3   :  { %16 = vsyncpa [#allocation4], 0  ;;  %s3801_s27 = smov [#allocation5]   ;;  %s3661_s9 = scalar_lea.hbm %s4449_s1, 3072 }
   0x4   :  { %s34_s28 = sshll.u32 %s3801_s27, 4  ;;  %p3662_p0 = scmp.ne.s32.totalorder %s4449_s1, %s3661_s9  ;;  %s35_s28 = int_to_ptr.vmem [resolvable:$true] %s34_s28 }
   0x5   :  { %p3665_p1 = scmp.lt.u32.totalorder %s3661_s9, %s4449_s1 }
   0x7   :  { %p3667_p2 = pnand %p3665_p1, %p3662_p0 }
   0x9   :  { %3670 = shalt.err (!%p3667_p2)
}
   0xa   :  { %s3671_s14 = scalar_lea.vmem %s35_s28, 3072  ;;  %p3676_p4 = scmp.lt.s32.totalorder %s35_s28, %s35_s28 }
   0xb   :  { %p3672_p3 = scmp.ne.s32.totalorder %s35_s28, %s3671_s14  ;;  %p3677_p5 = scmp.lt.s32.totalorder %s3671_s14, %s3671_s14 }
   0xd   :  { %p3678_p6 = por %p3677_p5, %p3676_p4 }
   0xf   :  { %p3679_p7 = pnand %p3678_p6, %p3672_p3 }
  0x11   :  { %3682 = shalt.err (!%p3679_p7)
}
  0x12   :  { %s3802_s15 = smov 192   ;;  %s3803_s16 = smov 12  }
  0x13   :  { %40 = dma.hbm_to_vmem [thread:$0]  %s4449_s1, 3072, %s35_s28, [#allocation6], %s3802_s15, %s3802_s15, %s3803_s16  }
  0x14   :  { %s3804_s19 = smov [#allocation8]   ;;  %s3805_s21 = smov [#allocation2]  }
  0x15   :  { %s60_s20 = sshll.u32 %s3804_s19, 4  ;;  %s22_s22 = sshll.u32 %s3805_s21, 4  ;;  %s61_s20 = int_to_ptr.vmem [resolvable:$true] %s60_s20  ;;  %s23_s22 = int_to_ptr.vmem [resolvable:$true] %s22_s22 }
  0x16   :  { %s3683_s25 = scalar_lea.hbm %s4452_s4, 2048 }
  0x17   :  { %p3684_p8 = scmp.ne.s32.totalorder %s4452_s4, %s3683_s25  ;;  %p3687_p9 = scmp.lt.u32.totalorder %s3683_s25, %s4452_s4 }
  0x19   :  { %p3689_p10 = pnand %p3687_p9, %p3684_p8 }
  0x1b   :  { %3692 = shalt.err (!%p3689_p10)
}
  0x1c   :  { %s3693_s1 = scalar_lea.vmem %s61_s20, 2048  ;;  %p3698_p12 = scmp.lt.s32.totalorder %s61_s20, %s61_s20 }
  0x1d   :  { %p3694_p11 = scmp.ne.s32.totalorder %s61_s20, %s3693_s1  ;;  %p3699_p13 = scmp.lt.s32.totalorder %s3693_s1, %s3693_s1 }
  0x1f   :  { %p3700_p0 = por %p3699_p13, %p3698_p12 }
  0x21   :  { %p3701_p1 = pnand %p3700_p0, %p3694_p11 }
  0x23   :  { %3704 = shalt.err (!%p3701_p1)
}
  0x24   :  { %s3806_s28 = smov 128   ;;  %s3807_s9 = smov 8  }
  0x25   :  { %66 = dma.hbm_to_vmem [thread:$0]  %s4452_s4, 2048, %s61_s20, [#allocation9], %s3806_s28, %s3806_s28, %s3807_s9  }
  0x26   :  { %s3705_s14 = scalar_lea.hbm %s4448_s0, 512 }
  0x27   :  { %p3706_p2 = scmp.ne.s32.totalorder %s4448_s0, %s3705_s14  ;;  %p3709_p3 = scmp.lt.u32.totalorder %s3705_s14, %s4448_s0 }
  0x29   :  { %p3711_p4 = pnand %p3709_p3, %p3706_p2 }
  0x2b   :  { %3714 = shalt.err (!%p3711_p4)
}
  0x2c   :  { %s3715_s19 = scalar_lea.vmem %s23_s22, 512  ;;  %p3720_p6 = scmp.lt.s32.totalorder %s23_s22, %s23_s22 }
  0x2d   :  { %p3716_p5 = scmp.ne.s32.totalorder %s23_s22, %s3715_s19  ;;  %p3721_p7 = scmp.lt.s32.totalorder %s3715_s19, %s3715_s19 }
  0x2f   :  { %p3722_p8 = por %p3721_p7, %p3720_p6 }
  0x31   :  { %p3723_p9 = pnand %p3722_p8, %p3716_p5 }
  0x33   :  { %3726 = shalt.err (!%p3723_p9)
}
  0x34   :  { %28 = dma.hbm_to_vmem [thread:$0]  %s4448_s0, 512, %s23_s22, [#allocation3], %s3806_s28, %s3806_s28, %s3807_s9  }
  0x35   :  { %s3808_s21 = smov [#allocation7]   ;;  %s3727_s26 = scalar_lea.hbm %s4451_s3, 1024 }
  0x36   :  { %s48_s23 = sshll.u32 %s3808_s21, 4  ;;  %p3728_p10 = scmp.ne.s32.totalorder %s4451_s3, %s3727_s26  ;;  %s49_s23 = int_to_ptr.vmem [resolvable:$true] %s48_s23 }
  0x37   :  { %p3731_p11 = scmp.lt.u32.totalorder %s3727_s26, %s4451_s3 }
  0x39   :  { %p3733_p12 = pnand %p3731_p11, %p3728_p10 }
  0x3b   :  { %3736 = shalt.err (!%p3733_p12)
}
  0x3c   :  { %s3737_s10 = scalar_lea.vmem %s49_s23, 1024  ;;  %p3742_p0 = scmp.lt.s32.totalorder %s49_s23, %s49_s23 }
  0x3d   :  { %p3738_p13 = scmp.ne.s32.totalorder %s49_s23, %s3737_s10  ;;  %p3743_p1 = scmp.lt.s32.totalorder %s3737_s10, %s3737_s10 }
  0x3f   :  { %p3744_p2 = por %p3743_p1, %p3742_p0 }
  0x41   :  { %p3745_p3 = pnand %p3744_p2, %p3738_p13 }
  0x43   :  { %3748 = shalt.err (!%p3745_p3)
}
  0x44   :  { %s3809_s0 = smov 64   ;;  %s3810_s22 = smov 4  }
  0x45   :  { %54 = dma.hbm_to_vmem [thread:$0]  %s4451_s3, 1024, %s49_s23, [#allocation6], %s3809_s0, %s3809_s0, %s3810_s22  }
  0x46   :  { %s3811_s13 = smov [#allocation10]   ;;  %s3749_s17 = scalar_lea.hbm %s4453_s5, 2048 }
  0x47   :  { %s72_s14 = sshll.u32 %s3811_s13, 4  ;;  %p3750_p4 = scmp.ne.s32.totalorder %s4453_s5, %s3749_s17  ;;  %s73_s14 = int_to_ptr.vmem [resolvable:$true] %s72_s14 }
  0x48   :  { %p3753_p5 = scmp.lt.u32.totalorder %s3749_s17, %s4453_s5 }
  0x4a   :  { %p3755_p6 = pnand %p3753_p5, %p3750_p4 }
  0x4c   :  { %3758 = shalt.err (!%p3755_p6)
}
  0x4d   :  { %s3759_s21 = scalar_lea.vmem %s73_s14, 2048  ;;  %p3764_p8 = scmp.lt.s32.totalorder %s73_s14, %s73_s14 }
  0x4e   :  { %p3760_p7 = scmp.ne.s32.totalorder %s73_s14, %s3759_s21  ;;  %p3765_p9 = scmp.lt.s32.totalorder %s3759_s21, %s3759_s21 }
  0x50   :  { %p3766_p10 = por %p3765_p9, %p3764_p8 }
  0x52   :  { %p3767_p11 = pnand %p3766_p10, %p3760_p7 }
  0x54   :  { %3770 = shalt.err (!%p3767_p11)
}
  0x55   :  { %78 = dma.hbm_to_vmem [thread:$0]  %s4453_s5, 2048, %s73_s14, [#allocation9], %s3809_s0, %s3809_s0, %s3810_s22  }
  0x56   :  { %3793 = dma.done.wait [#allocation3], 512  }
  0x57   :  { %3794 = vsyncadd [#allocation3], 4294966784 }
  0x58   :  { %3795 = dma.done.wait [#allocation6], 4096  }
  0x59   :  { %3796 = vsyncadd [#allocation6], 4294963200 }
  0x5a   :  { %3797 = dma.done.wait [#allocation9], 4096  }
  0x5b   :  { %3798 = vsyncadd [#allocation9], 4294963200  ;;  %v3812_v0 = vmov 0   ;;  %v3497_v1 = vld [vmem:[#allocation5 + $0x4] ss:$12 sps:$4 sm:$0xff]   ;;  %v106_v11 = vld [vmem:[#allocation2 + $0x8] sm:$0xff]  ;;  %v145_v32 = vlaneseq }
  0x5c   :  { %320 = vmatprep.mubr.bf16.mxu0 %v3812_v0  ;;  %v3499_v2 = vld [vmem:[#allocation5] ss:$12 sps:$4 sm:$0xff]   ;;  %288 = vmatprep.subr.bf16.mxu0 %v3497_v1  ;;  %v3500_v3 = vld [vmem:[#allocation5 + $0x1c] ss:$12 sps:$4 sm:$0xff]   ;;  %v3502_v4 = vld [vmem:[#allocation5 + $0x18] ss:$12 sps:$4 sm:$0xff]  }
  0x5d   :  { %289 = vmatpush1.bf16.msra.mxu0 %v3499_v2  ;;  %v3503_v5 = vld [vmem:[#allocation5 + $0x34] ss:$12 sps:$4 sm:$0xff]   ;;  %v3505_v6 = vld [vmem:[#allocation5 + $0x30] ss:$12 sps:$4 sm:$0xff]   ;;  %v3506_v7 = vld [vmem:[#allocation5 + $0x4c] ss:$12 sps:$4 sm:$0xff]  }
  0x5e   :  { %290 = vmatprep.subr.bf16.mxu0 %v3500_v3  ;;  %v105_v8 = vld [vmem:[#allocation2] sm:$0xff]  ;;  %v3508_v9 = vld [vmem:[#allocation5 + $0x48] ss:$12 sps:$4 sm:$0xff]   ;;  %v3524_v20 = vld [vmem:[#allocation5 + $0x50] ss:$12 sps:$4 sm:$0xff]   ;;  %v3813_v31 = vmov 0.0  }
  0x5f   :  { %v3509_v10 = vld [vmem:[#allocation5 + $0x64] ss:$12 sps:$4 sm:$0xff]   ;;  %v109_v12 = vpack.c.bf16 %v106_v11, %v105_v8  ;;  %v3521_v13 = vld [vmem:[#allocation5 + $0x8] ss:$12 sps:$4 sm:$0xff]   ;;  %v3522_v14 = vld [vmem:[#allocation5 + $0x20] ss:$12 sps:$4 sm:$0xff]  }
  0x60   :  { %v3511_v15 = vld [vmem:[#allocation5 + $0x60] ss:$12 sps:$4 sm:$0xff]   ;;  %3128 = vmatprep.subr.bf16.mxu1 %v3521_v13  ;;  %v3512_v16 = vld [vmem:[#allocation5 + $0x7c] ss:$12 sps:$4 sm:$0xff]   ;;  %v3523_v17 = vld [vmem:[#allocation5 + $0x38] ss:$12 sps:$4 sm:$0xff]  }
  0x61   :  { %291 = vmatpush1.bf16.msra.mxu0 %v3502_v4  ;;  %3144 = vmatprep.mubr.bf16.mxu1 %v109_v12  ;;  %v3514_v18 = vld [vmem:[#allocation5 + $0x78] ss:$12 sps:$4 sm:$0xff]   ;;  %v3515_v19 = vld [vmem:[#allocation5 + $0x94] ss:$12 sps:$4 sm:$0xff]   ;;  %v3517_v21 = vld [vmem:[#allocation5 + $0x90] ss:$12 sps:$4 sm:$0xff]  }
  0x62   :  { %292 = vmatprep.subr.bf16.mxu0 %v3503_v5  ;;  %3129 = vmatpush3.bf16.msra.mxu1 %v3521_v13  ;;  %v3518_v22 = vld [vmem:[#allocation5 + $0xac] ss:$12 sps:$4 sm:$0xff]   ;;  %v3525_v23 = vld [vmem:[#allocation5 + $0x68] ss:$12 sps:$4 sm:$0xff]   ;;  %v3528_v30 = vld [vmem:[#allocation5 + $0xb0] ss:$12 sps:$4 sm:$0xff]  }
  0x63   :  { %3130 = vmatprep.subr.bf16.mxu1 %v3522_v14  ;;  %v3520_v24 = vld [vmem:[#allocation5 + $0xa8] ss:$12 sps:$4 sm:$0xff]   ;;  %v3526_v25 = vld [vmem:[#allocation5 + $0x80] ss:$12 sps:$4 sm:$0xff]   ;;  %v108_v27 = vld [vmem:[#allocation2 + $0x18] sm:$0xff]  ;;  %vm3814_vm0 = vmmov 0  }
  0x64   :  { %v107_v26 = vld [vmem:[#allocation2 + $0x10] sm:$0xff]  ;;  %v3527_v29 = vld [vmem:[#allocation5 + $0x98] ss:$12 sps:$4 sm:$0xff]   ;;  %v3941_v33 = vshrl.u32 %v145_v32, 7  ;;  %v3947_v35 = vld [vmem:[%s4450_s2] sm:$0x7] }
  0x65   :  { %293 = vmatpush1.bf16.msra.mxu0 %v3505_v6  ;;  %v110_v28 = vpack.c.bf16 %v108_v27, %v107_v26  ;;  %vm558_vm1 = vcmask 261120   ;;  %s3815_s2 = smov 96   ;;  %s3816_s25 = smov 32   ;;  %vm1491_vm2 = vcmask 1043456   ;;  %vm1295_vm3 = vcmask 64512  }
  0x66   :  { %294 = vmatprep.subr.bf16.mxu0 %v3506_v7  ;;  %3131 = vmatpush3.bf16.msra.mxu1 %v3522_v14  ;;  %v151_v34 = vsub.s32 1, %v3941_v33  ;;  %v147_v36 = vsub.s32 0, %v3941_v33  ;;  %v155_v8 = vsub.s32 2, %v3941_v33  ;;  %vm2277_vm4 = vcmask 523264   ;;  %s3817_s16 = smov [#allocation11]  }
  0x67   :  { %3132 = vmatprep.subr.bf16.mxu1 %v3523_v17  ;;  %vm2282_vm5 = vcmask 785408   ;;  %s2900_s17 = sshll.u32 %s3817_s16, 4  ;;  %s2901_s17 = int_to_ptr.vmem [resolvable:$true] %s2900_s17 }
  0x68   :  { %v152_v37 = vrot.slane %v3947_v35, %v151_v34  ;;  %v148_v38 = vrot.slane %v3947_v35, %v147_v36  ;;  %v3992_v11 = vrot.slane %v3947_v35, %v155_v8  ;;  %p3776_p13 = scmp.lt.s32.totalorder %s2901_s17, %s2901_s17 }
  0x69   :  { %295 = vmatpush1.bf16.msra.mxu0 %v3508_v9 }
  0x6a   :  { %296 = vmatprep.subr.bf16.mxu0 %v3509_v10  ;;  %3133 = vmatpush3.bf16.msra.mxu1 %v3523_v17 }
  0x6b   :  { %3134 = vmatprep.subr.bf16.mxu1 %v3524_v20 }
  0x6d   :  { %297 = vmatpush1.bf16.msra.mxu0 %v3511_v15 }
  0x6e   :  { %298 = vmatprep.subr.bf16.mxu0 %v3512_v16  ;;  %3135 = vmatpush3.bf16.msra.mxu1 %v3524_v20 }
  0x6f   :  { %3136 = vmatprep.subr.bf16.mxu1 %v3525_v23 }
  0x71   :  { %299 = vmatpush1.bf16.msra.mxu0 %v3514_v18 }
  0x72   :  { %300 = vmatprep.subr.bf16.mxu0 %v3515_v19  ;;  %3137 = vmatpush3.bf16.msra.mxu1 %v3525_v23 }
  0x73   :  { %3138 = vmatprep.subr.bf16.mxu1 %v3526_v25 }
  0x75   :  { %301 = vmatpush1.bf16.msra.mxu0 %v3517_v21 }
  0x76   :  { %302 = vmatprep.subr.bf16.mxu0 %v3518_v22  ;;  %3139 = vmatpush3.bf16.msra.mxu1 %v3526_v25 }
  0x77   :  { %3140 = vmatprep.subr.bf16.mxu1 %v3527_v29 }
  0x79   :  { %303 = vmatpush1.bf16.msra.mxu0 %v3520_v24 }
  0x7a   :  { %3141 = vmatpush3.bf16.msra.mxu1 %v3527_v29  ;;  %3148 = vmatprep.subr.bf16.mxu0 %v3813_v31 }
  0x7b   :  { %3142 = vmatprep.subr.bf16.mxu1 %v3528_v30 }
  0x7c   :  { %321 = vmatmul.mubr.bf16.vlgmr.msra.gmra.mrb[0].mxu0 %v109_v12 }
  0x7d   :  { %330 = vmatprep.mubr.bf16.mxu0 %v3812_v0 }
  0x7e   :  { %3143 = vmatpush3.bf16.msra.mxu1 %v3528_v30 }
  0x7f   :  { %3160 = vmatprep.subr.bf16.mxu1 %v3813_v31 }
  0x81   :  { %3145 = vmatmul.mubr.bf16.vlgmr.msra.gmra.mrb[0].mxu1 %v110_v28 }
  0x82   :  { %3162 = vmatprep.mubr.msk.bf16.mxu1 %vm3814_vm0, %v3813_v31 }
  0x84   :  { %331 = vmatmul.mubr.bf16.gmra.mrb[4].mxu0 %v110_v28 }
  0x85   :  { %3150 = vmatprep.mubr.msk.bf16.mxu0 %vm3814_vm0, %v3813_v31 }
 0x14f   :  { %v322_v39 = vpop.f32.mrb[0].mxu0 }
 0x150   :  { %v324_v40 = vpop.f32.mrb[1].mxu0  ;;  %v323_v43 = vadd.f32 %v322_v39, %v148_v38 }
 0x151   :  { %v325_v41 = vadd.f32 %v324_v40, %v152_v37  ;;  %v326_v42 = vpop.f32.mrb[2].mxu0 }
 0x152   :  { %v327_v44 = vadd.f32 %v326_v42, %v148_v38  ;;  %v328_v45 = vpop.f32.mrb[3].mxu0  ;;  %v430_v59 = vpack.c.bf16 %v323_v43, %v323_v43 }
 0x153   :  { %v329_v46 = vadd.f32 %v328_v45, %v152_v37  ;;  %v486_v47 = vpack.c.bf16 %v325_v41, %v325_v41 }
 0x154   :  { %v3382_v48 = vpack.i.bf16 %v327_v44, %v323_v43  ;;  %v431_v5 = vpack.c.bf16 %v327_v44, %v327_v44  ;;  %v3146_v9 = vpop.f32.mrb[0].mxu1 }
 0x155   :  { %v563_v49 = vsel %vm558_vm1, %v486_v47, 0  ;;  %v3377_v50 = vpack.i.bf16 %v329_v46, %v325_v41  ;;  %v487_v56 = vpack.c.bf16 %v329_v46, %v329_v46  ;;  %v3989_v10 = vpop.f32.mrb[1].mxu1  ;;  %v3997_v14 = vadd.f32 %v3146_v9, %v3992_v11 }
 0x156   :  { %3149 = vmatpush3.bf16.xpose.msra.mxu0 %v563_v49  ;;  %v3147_v12 = vpop.f32.mrb[2].mxu1 }
 0x157   :  { %v332_v51 = vpop.f32.mrb[4].mxu0  ;;  %3378 = vrot.lane.b32.xlu0 %v3377_v50, %s3815_s2  ;;  %3154 = vmatprep.subr.bf16.mxu0 %v3813_v31  ;;  %v609_v63 = vsel %vm558_vm1, %v487_v56, 0  ;;  %v3994_v13 = vpop.f32.mrb[3].mxu1  ;;  %v4000_v15 = vadd.f32 %v3147_v12, %v3992_v11 }
 0x158   :  { %v333_v52 = vadd.f32 %v332_v51, %v148_v38  ;;  %v334_v53 = vpop.f32.mrb[5].mxu0 }
 0x159   :  { %v335_v54 = vadd.f32 %v334_v53, %v152_v37  ;;  %v336_v55 = vpop.f32.mrb[6].mxu0 }
 0x15a   :  { %v337_v57 = vadd.f32 %v336_v55, %v148_v38  ;;  %v338_v58 = vpop.f32.mrb[7].mxu0  ;;  %v432_v4 = vpack.c.bf16 %v333_v52, %v333_v52 }
 0x15b   :  { %v339_v60 = vadd.f32 %v338_v58, %v152_v37  ;;  %3383 = vrot.lane.b32.xlu0 %v3382_v48, %s3815_s2  ;;  %v488_v61 = vpack.c.bf16 %v335_v54, %v335_v54 }
 0x15c   :  { %v3392_v62 = vpack.i.bf16 %v337_v57, %v333_v52  ;;  %v433_v7 = vpack.c.bf16 %v337_v57, %v337_v57 }
 0x15d   :  { %3151 = vmatmul.mubr.msk.bf16.vlgmr.msra.gmra.mrb[8].mxu0 %vm558_vm1, %v430_v59  ;;  %v655_v1 = vsel %vm558_vm1, %v488_v61, 0  ;;  %v3387_v2 = vpack.i.bf16 %v339_v60, %v335_v54  ;;  %v489_v3 = vpack.c.bf16 %v339_v60, %v339_v60 }
 0x15e   :  { %3155 = vmatpush3.bf16.xpose.msra.mxu0 %v609_v63  ;;  %3161 = vmatpush3.bf16.xpose.msra.mxu1 %v655_v1 }
 0x15f   :  { %3388 = vrot.lane.b32.xlu1 %v3387_v2, %s3815_s2  ;;  %3398 = vrot.lane.b32.xlu0 %v3377_v50, %s3809_s0  ;;  %v701_v6 = vsel %vm558_vm1, %v489_v3, 0 }
 0x160   :  { %3156 = vmatprep.mubr.msk.bf16.mxu0 %vm3814_vm0, %v3813_v31  ;;  %3166 = vmatprep.subr.bf16.mxu0 %v3813_v31 }
 0x161   :  { %3172 = vmatprep.subr.bf16.mxu1 %v3813_v31 }
 0x163   :  { %3393 = vrot.lane.b32.xlu1 %v3392_v62, %s3815_s2  ;;  %3408 = vrot.lane.b32.xlu0 %v3387_v2, %s3809_s0 }
 0x165   :  { %3157 = vmatmul.mubr.msk.bf16.vlgmr.msra.gmra.mrb[12].mxu0 %vm558_vm1, %v431_v5  ;;  %3163 = vmatmul.mubr.msk.bf16.vlgmr.msra.gmra.mrb[4].mxu1 %vm558_vm1, %v432_v4 }
 0x166   :  { %3167 = vmatpush3.bf16.xpose.msra.mxu0 %v701_v6  ;;  %3168 = vmatprep.mubr.msk.bf16.mxu0 %vm3814_vm0, %v3813_v31 }
 0x167   :  { %3403 = vrot.lane.b32.xlu1 %v3382_v48, %s3809_s0  ;;  %3418 = vrot.lane.b32.xlu0 %v3377_v50, %s3816_s25 }
 0x168   :  { %3178 = vmatprep.subr.bf16.mxu0 %v3813_v31  ;;  %3174 = vmatprep.mubr.msk.bf16.mxu1 %vm3814_vm0, %v3813_v31 }
 0x16b   :  { %3413 = vrot.lane.b32.xlu1 %v3392_v62, %s3809_s0  ;;  %3428 = vrot.lane.b32.xlu0 %v3387_v2, %s3816_s25 }
 0x16d   :  { %3169 = vmatmul.mubr.msk.bf16.vlgmr.msra.gmra.mrb[16].mxu0 %vm558_vm1, %v433_v7 }
 0x16e   :  { %3180 = vmatprep.mubr.msk.bf16.mxu0 %vm3814_vm0, %v3813_v31 }
 0x16f   :  { %3423 = vrot.lane.b32.xlu1 %v3382_v48, %s3816_s25 }
 0x173   :  { %3433 = vrot.lane.b32.xlu1 %v3392_v62, %s3816_s25 }
 0x1c9   :  { %v3379_v16 = vpop.permute.xlu0 %3378 }
 0x1ca   :  { %v3381_v17 = vunpack.i.h.bf16 %v3379_v16  ;;  %v3380_v18 = vunpack.i.l.bf16 %v3379_v16 }
 0x1cc   :  { %v491_v19 = vpack.c.bf16 %v3381_v17, %v3381_v17  ;;  %v490_v20 = vpack.c.bf16 %v3380_v18, %v3380_v18 }
 0x1cd   :  { %v3384_v21 = vpop.permute.xlu0 %3383 }
 0x1ce   :  { %v747_v22 = vsel %vm558_vm1, %v490_v20, 0  ;;  %v793_v23 = vsel %vm558_vm1, %v491_v19, 0  ;;  %v3386_v24 = vunpack.i.h.bf16 %v3384_v21  ;;  %v3385_v25 = vunpack.i.l.bf16 %v3384_v21 }
 0x1cf   :  { %3173 = vmatpush3.bf16.xpose.msra.mxu1 %v747_v22  ;;  %3179 = vmatpush3.bf16.xpose.msra.mxu0 %v793_v23 }
 0x1d0   :  { %3184 = vmatprep.subr.bf16.mxu1 %v3813_v31  ;;  %3190 = vmatprep.subr.bf16.mxu0 %v3813_v31  ;;  %v435_v29 = vpack.c.bf16 %v3386_v24, %v3386_v24  ;;  %v434_v30 = vpack.c.bf16 %v3385_v25, %v3385_v25 }
 0x1d1   :  { %v3389_v26 = vpop.permute.xlu1 %3388  ;;  %v3399_v37 = vpop.permute.xlu0 %3398 }
 0x1d2   :  { %v3391_v27 = vunpack.i.h.bf16 %v3389_v26  ;;  %v3390_v28 = vunpack.i.l.bf16 %v3389_v26  ;;  %v3400_v39 = vunpack.i.l.bf16 %v3399_v37  ;;  %v3401_v43 = vunpack.i.h.bf16 %v3399_v37 }
 0x1d4   :  { %v493_v32 = vpack.c.bf16 %v3391_v27, %v3391_v27  ;;  %v492_v35 = vpack.c.bf16 %v3390_v28, %v3390_v28  ;;  %v494_v45 = vpack.c.bf16 %v3400_v39, %v3400_v39  ;;  %v495_v47 = vpack.c.bf16 %v3401_v43, %v3401_v43 }
 0x1d5   :  { %v3394_v38 = vpop.permute.xlu1 %3393  ;;  %v3409_v49 = vpop.permute.xlu0 %3408  ;;  %v4049_v27 = vadd.f32 %v3989_v10, %v3992_v11 }
 0x1d6   :  { %3175 = vmatmul.mubr.msk.bf16.vlgmr.msra.gmra.mrb[8].mxu1 %vm558_vm1, %v434_v30  ;;  %3181 = vmatmul.mubr.msk.bf16.vlgmr.msra.gmra.mrb[20].mxu0 %vm558_vm1, %v435_v29  ;;  %v3395_v40 = vunpack.i.l.bf16 %v3394_v38  ;;  %v839_v41 = vsel %vm558_vm1, %v492_v35, 0  ;;  %v885_v42 = vsel %vm558_vm1, %v493_v32, 0  ;;  %v3396_v44 = vunpack.i.h.bf16 %v3394_v38 }
 0x1d7   :  { %3186 = vmatprep.mubr.msk.bf16.mxu1 %vm3814_vm0, %v3813_v31  ;;  %3192 = vmatprep.mubr.msk.bf16.mxu0 %vm3814_vm0, %v3813_v31  ;;  %v3410_v50 = vunpack.i.l.bf16 %v3409_v49  ;;  %v3411_v51 = vunpack.i.h.bf16 %v3409_v49  ;;  %v931_v53 = vsel %vm558_vm1, %v494_v45, 0  ;;  %v977_v54 = vsel %vm558_vm1, %v495_v47, 0 }
 0x1d8   :  { %3185 = vmatpush3.bf16.xpose.msra.mxu1 %v839_v41  ;;  %3191 = vmatpush3.bf16.xpose.msra.mxu0 %v885_v42  ;;  %v436_v46 = vpack.c.bf16 %v3395_v40, %v3395_v40  ;;  %v437_v48 = vpack.c.bf16 %v3396_v44, %v3396_v44  ;;  %v4054_v32 = vadd.f32 %v3994_v13, %v3992_v11 }
 0x1d9   :  { %3196 = vmatprep.subr.bf16.mxu1 %v3813_v31  ;;  %3202 = vmatprep.subr.bf16.mxu0 %v3813_v31  ;;  %v3404_v52 = vpop.permute.xlu1 %3403  ;;  %v496_v55 = vpack.c.bf16 %v3410_v50, %v3410_v50  ;;  %v497_v57 = vpack.c.bf16 %v3411_v51, %v3411_v51  ;;  %v3419_v59 = vpop.permute.xlu0 %3418  ;;  %v542_v10 = vpack.c.bf16 %v4049_v27, %v4049_v27 }
 0x1da   :  { %v3405_v56 = vunpack.i.l.bf16 %v3404_v52  ;;  %v3406_v58 = vunpack.i.h.bf16 %v3404_v52  ;;  %v3420_v2 = vunpack.i.l.bf16 %v3419_v59  ;;  %v3421_v4 = vunpack.i.h.bf16 %v3419_v59 }
 0x1db   :  { %v1023_v61 = vsel %vm558_vm1, %v496_v55, 0  ;;  %v1069_v1 = vsel %vm558_vm1, %v497_v57, 0  ;;  %v543_v11 = vpack.c.bf16 %v4054_v32, %v4054_v32  ;;  %v1493_v38 = vsel %vm1491_vm2, %v542_v10, 0 }
 0x1dc   :  { %v438_v60 = vpack.c.bf16 %v3405_v56, %v3405_v56  ;;  %v439_v62 = vpack.c.bf16 %v3406_v58, %v3406_v58  ;;  %v498_v7 = vpack.c.bf16 %v3420_v2, %v3420_v2  ;;  %v499_v9 = vpack.c.bf16 %v3421_v4, %v3421_v4 }
 0x1dd   :  { %v3414_v63 = vpop.permute.xlu1 %3413  ;;  %v3429_v6 = vpop.permute.xlu0 %3428  ;;  %v1539_v40 = vsel %vm1491_vm2, %v543_v11, 0  ;;  %v4080_v41 = vpack.i.bf16 %v4000_v15, %v3997_v14 }
 0x1de   :  { %v3415_v3 = vunpack.i.l.bf16 %v3414_v63  ;;  %v3416_v5 = vunpack.i.h.bf16 %v3414_v63  ;;  %v3430_v16 = vunpack.i.l.bf16 %v3429_v6  ;;  %v3431_v18 = vunpack.i.h.bf16 %v3429_v6 }
 0x1df   :  { %3187 = vmatmul.mubr.msk.bf16.vlgmr.msra.gmra.mrb[12].mxu1 %vm558_vm1, %v436_v46  ;;  %3193 = vmatmul.mubr.msk.bf16.vlgmr.msra.gmra.mrb[24].mxu0 %vm558_vm1, %v437_v48  ;;  %v1115_v19 = vsel %vm558_vm1, %v498_v7, 0  ;;  %v1161_v20 = vsel %vm558_vm1, %v499_v9, 0 }
 0x1e0   :  { %3197 = vmatpush3.bf16.xpose.msra.mxu1 %v931_v53  ;;  %3203 = vmatpush3.bf16.xpose.msra.mxu0 %v977_v54  ;;  %v440_v8 = vpack.c.bf16 %v3415_v3, %v3415_v3  ;;  %v441_v12 = vpack.c.bf16 %v3416_v5, %v3416_v5  ;;  %v500_v22 = vpack.c.bf16 %v3430_v16, %v3430_v16 }
 0x1e1   :  { %3198 = vmatprep.mubr.msk.bf16.mxu1 %vm3814_vm0, %v3813_v31  ;;  %3204 = vmatprep.mubr.msk.bf16.mxu0 %vm3814_vm0, %v3813_v31  ;;  %v3424_v17 = vpop.permute.xlu1 %3423  ;;  %v501_v24 = vpack.c.bf16 %v3431_v18, %v3431_v18 }
 0x1e2   :  { %3208 = vmatprep.subr.bf16.mxu1 %v3813_v31  ;;  %3214 = vmatprep.subr.bf16.mxu0 %v3813_v31  ;;  %v3425_v21 = vunpack.i.l.bf16 %v3424_v17  ;;  %v3426_v23 = vunpack.i.h.bf16 %v3424_v17  ;;  %v1207_v26 = vsel %vm558_vm1, %v500_v22, 0 }
 0x1e3   :  { %v1253_v30 = vsel %vm558_vm1, %v501_v24, 0  ;;  %v4116_v24 = vpack.i.bf16 %v4054_v32, %v4049_v27 }
 0x1e4   :  { %v442_v25 = vpack.c.bf16 %v3425_v21, %v3425_v21  ;;  %v443_v28 = vpack.c.bf16 %v3426_v23, %v3426_v23 }
 0x1e5   :  { %v3434_v29 = vpop.permute.xlu1 %3433 }
 0x1e6   :  { %v3435_v35 = vunpack.i.l.bf16 %v3434_v29  ;;  %v3436_v37 = vunpack.i.h.bf16 %v3434_v29 }
 0x1e7   :  { %3199 = vmatmul.mubr.msk.bf16.vlgmr.msra.gmra.mrb[16].mxu1 %vm558_vm1, %v438_v60  ;;  %3205 = vmatmul.mubr.msk.bf16.vlgmr.msra.gmra.mrb[28].mxu0 %vm558_vm1, %v439_v62 }
 0x1e8   :  { %3209 = vmatpush3.bf16.xpose.msra.mxu1 %v1023_v61  ;;  %3215 = vmatpush3.bf16.xpose.msra.mxu0 %v1069_v1  ;;  %v444_v13 = vpack.c.bf16 %v3435_v35, %v3435_v35  ;;  %v445_v39 = vpack.c.bf16 %v3436_v37, %v3436_v37 }
 0x1e9   :  { %3210 = vmatprep.mubr.msk.bf16.mxu1 %vm3814_vm0, %v3813_v31  ;;  %3216 = vmatprep.mubr.msk.bf16.mxu0 %vm3814_vm0, %v3813_v31 }
 0x1ea   :  { %3220 = vmatprep.subr.bf16.mxu1 %v3813_v31  ;;  %3226 = vmatprep.subr.bf16.mxu0 %v3813_v31 }
 0x1ef   :  { %3211 = vmatmul.mubr.msk.bf16.vlgmr.msra.gmra.mrb[20].mxu1 %vm558_vm1, %v440_v8  ;;  %3217 = vmatmul.mubr.msk.bf16.vlgmr.msra.gmra.mrb[32].mxu0 %vm558_vm1, %v441_v12 }
 0x1f0   :  { %3221 = vmatpush3.bf16.xpose.msra.mxu1 %v1115_v19  ;;  %3227 = vmatpush3.bf16.xpose.msra.mxu0 %v1161_v20 }
 0x1f1   :  { %3222 = vmatprep.mubr.msk.bf16.mxu1 %vm3814_vm0, %v3813_v31  ;;  %3228 = vmatprep.mubr.msk.bf16.mxu0 %vm3814_vm0, %v3813_v31 }
 0x1f2   :  { %3232 = vmatprep.subr.bf16.mxu1 %v3813_v31  ;;  %3238 = vmatprep.subr.bf16.mxu0 %v3813_v31 }
 0x1f7   :  { %3223 = vmatmul.mubr.msk.bf16.vlgmr.msra.gmra.mrb[24].mxu1 %vm558_vm1, %v442_v25  ;;  %3229 = vmatmul.mubr.msk.bf16.vlgmr.msra.gmra.mrb[36].mxu0 %vm558_vm1, %v443_v28 }
 0x1f8   :  { %3233 = vmatpush3.bf16.xpose.msra.mxu1 %v1207_v26  ;;  %3239 = vmatpush3.bf16.xpose.msra.mxu0 %v1253_v30 }
 0x1f9   :  { %3234 = vmatprep.mubr.msk.bf16.mxu1 %vm3814_vm0, %v3813_v31  ;;  %3240 = vmatprep.mubr.msk.bf16.mxu0 %vm3814_vm0, %v3813_v31 }
 0x1fa   :  { %3244 = vmatprep.subr.bf16.mxu1 %v3813_v31  ;;  %3250 = vmatprep.subr.bf16.mxu0 %v3813_v31 }
 0x1ff   :  { %3235 = vmatmul.mubr.msk.bf16.vlgmr.msra.gmra.mrb[28].mxu1 %vm558_vm1, %v444_v13  ;;  %3241 = vmatmul.mubr.msk.bf16.vlgmr.msra.gmra.mrb[40].mxu0 %vm558_vm1, %v445_v39 }
 0x200   :  { %3245 = vmatpush3.bf16.msra.mxu1 %v1493_v38  ;;  %3251 = vmatpush3.bf16.msra.mxu0 %v1539_v40 }
 0x201   :  { %3252 = vmatprep.mubr.msk.bf16.mxu0 %vm3814_vm0, %v3813_v31  ;;  %3262 = vmatprep.subr.bf16.mxu0 %v3813_v31 }
 0x202   :  { %3246 = vmatprep.mubr.msk.bf16.mxu1 %vm3814_vm0, %v3813_v31  ;;  %3256 = vmatprep.subr.bf16.mxu1 %v3813_v31 }
 0x230   :  { %v4082_v42 = vpop.f32.mrb[8].mxu0 }
 0x231   :  { %v3152_v43 = vpop.f32.mrb[9].mxu0  ;;  %v1296_v44 = vsel %vm1295_vm3, %v4082_v42, -inf }
 0x232   :  { %1297 = vmax.xlane.f32.xlu0 %v1296_v44  ;;  %v602_v45 = vpop.f32.mrb[10].mxu0 }
 0x233   :  { %v3153_v46 = vpop.f32.mrb[11].mxu0 }
 0x238   :  { %v4086_v47 = vpop.f32.mrb[12].mxu0  ;;  %v4088_v48 = vpop.f32.mrb[4].mxu1 }
 0x239   :  { %v3158_v49 = vpop.f32.mrb[13].mxu0  ;;  %v1302_v50 = vsel %vm1295_vm3, %v4088_v48, -inf  ;;  %v1299_v51 = vsel %vm1295_vm3, %v4086_v47, -inf  ;;  %v3164_v52 = vpop.f32.mrb[5].mxu1 }
 0x23a   :  { %1303 = vmax.xlane.f32.xlu0 %v1302_v50  ;;  %1300 = vmax.xlane.f32.xlu1 %v1299_v51  ;;  %v648_v53 = vpop.f32.mrb[14].mxu0  ;;  %v694_v54 = vpop.f32.mrb[6].mxu1 }
 0x23b   :  { %v3159_v55 = vpop.f32.mrb[15].mxu0  ;;  %v3165_v56 = vpop.f32.mrb[7].mxu1 }
 0x240   :  { %v4094_v57 = vpop.f32.mrb[16].mxu0 }
 0x241   :  { %v1305_v58 = vsel %vm1295_vm3, %v4094_v57, -inf  ;;  %v3170_v59 = vpop.f32.mrb[17].mxu0 }
 0x242   :  { %1306 = vmax.xlane.f32.xlu0 %v1305_v58  ;;  %v740_v60 = vpop.f32.mrb[18].mxu0 }
 0x243   :  { %v3171_v61 = vpop.f32.mrb[19].mxu0 }
 0x2a9   :  { %v4098_v62 = vpop.f32.mrb[8].mxu1  ;;  %v4100_v63 = vpop.f32.mrb[20].mxu0 }
 0x2aa   :  { %v3176_v1 = vpop.f32.mrb[9].mxu1  ;;  %v3182_v2 = vpop.f32.mrb[21].mxu0  ;;  %v1308_v3 = vsel %vm1295_vm3, %v4098_v62, -inf  ;;  %v1311_v4 = vsel %vm1295_vm3, %v4100_v63, -inf }
 0x2ab   :  { %v786_v5 = vpop.f32.mrb[10].mxu1  ;;  %1309 = vmax.xlane.f32.xlu1 %v1308_v3  ;;  %1312 = vmax.xlane.f32.xlu0 %v1311_v4  ;;  %v832_v6 = vpop.f32.mrb[22].mxu0 }
 0x2ac   :  { %v3177_v7 = vpop.f32.mrb[11].mxu1  ;;  %v3183_v8 = vpop.f32.mrb[23].mxu0 }
 0x2b2   :  { %v4106_v9 = vpop.f32.mrb[12].mxu1  ;;  %v4108_v12 = vpop.f32.mrb[24].mxu0 }
 0x2b3   :  { %v3188_v16 = vpop.f32.mrb[13].mxu1  ;;  %v1317_v17 = vsel %vm1295_vm3, %v4108_v12, -inf  ;;  %v3194_v18 = vpop.f32.mrb[25].mxu0 }
 0x2b4   :  { %v878_v19 = vpop.f32.mrb[14].mxu1  ;;  %1318 = vmax.xlane.f32.xlu0 %v1317_v17  ;;  %v924_v20 = vpop.f32.mrb[26].mxu0  ;;  %v1314_v18 = vsel %vm1295_vm3, %v4106_v9, -inf }
 0x2b5   :  { %v3189_v21 = vpop.f32.mrb[15].mxu1  ;;  %v3195_v22 = vpop.f32.mrb[27].mxu0 }
 0x2ba   :  { %v4112_v23 = vpop.f32.mrb[16].mxu1  ;;  %v4118_v25 = vpop.f32.mrb[28].mxu0 }
 0x2bb   :  { %v3200_v26 = vpop.f32.mrb[17].mxu1  ;;  %v3206_v28 = vpop.f32.mrb[29].mxu0  ;;  %v1323_v30 = vsel %vm1295_vm3, %v4118_v25, -inf  ;;  %v1320_v20 = vsel %vm1295_vm3, %v4112_v23, -inf }
 0x2bc   :  { %v970_v29 = vpop.f32.mrb[18].mxu1  ;;  %3438 = vrot.lane.b32.xlu1 %v4116_v24, %s3815_s2  ;;  %1324 = vmax.xlane.f32.xlu0 %v1323_v30  ;;  %v1016_v35 = vpop.f32.mrb[30].mxu0 }
 0x2bd   :  { %v3201_v10 = vpop.f32.mrb[19].mxu1  ;;  %v3207_v37 = vpop.f32.mrb[31].mxu0 }
 0x2bf   :  { %v1298_v16 = vpop.xlane.xlu0 %1297 }
 0x2c0   :  { %v1344_v17 = vsub.f32 %v4082_v42, %v1298_v16 }
 0x2c2   :  { %v4124_v11 = vpop.f32.mrb[20].mxu1  ;;  %v4126_v13 = vpop.f32.mrb[32].mxu0  ;;  %v1360_v19 = vmul.f32 1.442695, %v1344_v17 }
 0x2c3   :  { %v3212_v27 = vpop.f32.mrb[21].mxu1  ;;  %v1329_v32 = vsel %vm1295_vm3, %v4126_v13, -inf  ;;  %v3218_v38 = vpop.f32.mrb[33].mxu0  ;;  %v1326_v21 = vsel %vm1295_vm3, %v4124_v11, -inf }
 0x2c4   :  { %v1062_v39 = vpop.f32.mrb[22].mxu1  ;;  %1330 = vmax.xlane.f32.xlu0 %v1329_v32  ;;  %v1108_v40 = vpop.f32.mrb[34].mxu0 }
 0x2c5   :  { %v3213_v43 = vpop.f32.mrb[23].mxu1  ;;  %v3219_v44 = vpop.f32.mrb[35].mxu0 }
 0x2c7   :  { %v1301_v45 = vpop.xlane.xlu1 %1300  ;;  %v1304_v28 = vpop.xlane.xlu0 %1303 }
 0x2c8   :  { %v1345_v46 = vsub.f32 %v4086_v47, %v1301_v45  ;;  %v1346_v32 = vsub.f32 %v4088_v48, %v1304_v28 }
 0x2ca   :  { %v1362_v49 = vmul.f32 1.442695, %v1345_v46  ;;  %v4131_v50 = vpop.f32.mrb[24].mxu1  ;;  %v4133_v51 = vpop.f32.mrb[36].mxu0  ;;  %v1364_v38 = vmul.f32 1.442695, %v1346_v32 }
 0x2cb   :  { %v3224_v52 = vpop.f32.mrb[25].mxu1  ;;  %v3230_v53 = vpop.f32.mrb[37].mxu0  ;;  %v1335_v55 = vsel %vm1295_vm3, %v4133_v51, -inf  ;;  %v1332_v22 = vsel %vm1295_vm3, %v4131_v50, -inf }
 0x2cc   :  { %v1154_v54 = vpop.f32.mrb[26].mxu1  ;;  %3577 = vpow2.f32 %v1362_v49  ;;  %1336 = vmax.xlane.f32.xlu0 %v1335_v55  ;;  %v1200_v56 = vpop.f32.mrb[38].mxu0 }
 0x2cd   :  { %v3225_v58 = vpop.f32.mrb[27].mxu1  ;;  %v3231_v59 = vpop.f32.mrb[39].mxu0  ;;  %3579 = vpow2.f32 %v1360_v19 }
 0x2cf   :  { %v1307_v30 = vpop.xlane.xlu0 %1306 }
 0x2d0   :  { %v1347_v35 = vsub.f32 %v4094_v57, %v1307_v30 }
 0x2d2   :  { %v4137_v60 = vpop.f32.mrb[28].mxu1  ;;  %v4139_v61 = vpop.f32.mrb[40].mxu0  ;;  %v1366_v10 = vmul.f32 1.442695, %v1347_v35 }
 0x2d3   :  { %v3236_v47 = vpop.f32.mrb[29].mxu1  ;;  %v3242_v1 = vpop.f32.mrb[41].mxu0  ;;  %v1341_v3 = vsel %vm1295_vm3, %v4139_v61, -inf  ;;  %v1338_v42 = vsel %vm1295_vm3, %v4137_v60, -inf }
 0x2d4   :  { %v1246_v2 = vpop.f32.mrb[30].mxu1  ;;  %1342 = vmax.xlane.f32.xlu0 %v1341_v3  ;;  %v1292_v4 = vpop.f32.mrb[42].mxu0  ;;  %3581 = vpow2.f32 %v1366_v10 }
 0x2d5   :  { %v3237_v5 = vpop.f32.mrb[31].mxu1  ;;  %v3243_v6 = vpop.f32.mrb[43].mxu0  ;;  %3583 = vpow2.f32 %v1364_v38 }
 0x2d6   :  { %v4143_v7 = vpop.eup %3577 }
 0x2d7   :  { %v1395_v8 = vsel %vm1295_vm3, %v4143_v7, 0.0  ;;  %v4160_v26 = vpop.eup %3579 }
 0x2d8   :  { %1396 = vadd.xlane.f32.xlu0 %v1395_v8  ;;  %v1392_v29 = vsel %vm1295_vm3, %v4160_v26, 0.0 }
 0x2de   :  { %v4167_v37 = vpop.eup %3581 }
 0x2df   :  { %v1401_v27 = vsel %vm1295_vm3, %v4167_v37, 0.0  ;;  %v4172_v39 = vpop.eup %3583 }
 0x2e0   :  { %1315 = vmax.xlane.f32.xlu1 %v1314_v18  ;;  %v1398_v57 = vsel %vm1295_vm3, %v4172_v39, 0.0 }
 0x2e4   :  { %1321 = vmax.xlane.f32.xlu1 %v1320_v20 }
 0x2e8   :  { %1327 = vmax.xlane.f32.xlu1 %v1326_v21 }
 0x2ec   :  { %1333 = vmax.xlane.f32.xlu1 %v1332_v22  ;;  %v545_v22 = vpack.c.bf16 %v4000_v15, %v4000_v15 }
 0x2ee   :  { %3443 = vrot.lane.b32.xlu0 %v4080_v41, %s3815_s2 }
 0x2f0   :  { %1339 = vmax.xlane.f32.xlu1 %v1338_v42 }
 0x2f4   :  { %1393 = vadd.xlane.f32.xlu1 %v1392_v29 }
 0x305   :  { %3448 = vrot.lane.b32.xlu1 %v4116_v24, %s3809_s0 }
 0x30d   :  { %1402 = vadd.xlane.f32.xlu0 %v1401_v27 }
 0x329   :  { %1399 = vadd.xlane.f32.xlu1 %v1398_v57 }
 0x338   :  { %v1310_v40 = vpop.xlane.xlu1 %1309  ;;  %v1313_v43 = vpop.xlane.xlu0 %1312 }
 0x339   :  { %v1348_v44 = vsub.f32 %v4098_v62, %v1310_v40  ;;  %v1349_v45 = vsub.f32 %v4100_v63, %v1313_v43 }
 0x33b   :  { %v1368_v46 = vmul.f32 1.442695, %v1348_v44  ;;  %v1370_v49 = vmul.f32 1.442695, %v1349_v45 }
 0x33d   :  { %3585 = vpow2.f32 %v1368_v46 }
 0x33e   :  { %3587 = vpow2.f32 %v1370_v49 }
 0x341   :  { %v1319_v52 = vpop.xlane.xlu0 %1318 }
 0x342   :  { %v1351_v48 = vsub.f32 %v4108_v12, %v1319_v52 }
 0x344   :  { %v1374_v53 = vmul.f32 1.442695, %v1351_v48 }
 0x346   :  { %3589 = vpow2.f32 %v1374_v53 }
 0x347   :  { %v4179_v54 = vpop.eup %3585 }
 0x348   :  { %v4181_v55 = vpop.eup %3587  ;;  %v1404_v56 = vsel %vm1295_vm3, %v4179_v54, 0.0 }
 0x349   :  { %1405 = vadd.xlane.f32.xlu1 %v1404_v56  ;;  %v1407_v62 = vsel %vm1295_vm3, %v4181_v55, 0.0  ;;  %v1325_v63 = vpop.xlane.xlu0 %1324 }
 0x34a   :  { %1408 = vadd.xlane.f32.xlu0 %v1407_v62  ;;  %v1353_v58 = vsub.f32 %v4118_v25, %v1325_v63  ;;  %v4196_v25 = vpop.permute.xlu1 %3438  ;;  %v544_v63 = vpack.c.bf16 %v3997_v14, %v3997_v14 }
 0x34c   :  { %v1378_v59 = vmul.f32 1.442695, %v1353_v58 }
 0x34e   :  { %3591 = vpow2.f32 %v1378_v59 }
 0x350   :  { %v4188_v12 = vpop.eup %3589 }
 0x351   :  { %v1413_v47 = vsel %vm1295_vm3, %v4188_v12, 0.0  ;;  %v1331_v2 = vpop.xlane.xlu0 %1330 }
 0x352   :  { %1414 = vadd.xlane.f32.xlu0 %v1413_v47  ;;  %v1355_v42 = vsub.f32 %v4126_v13, %v1331_v2  ;;  %v1585_v2 = vsel %vm1491_vm2, %v544_v63, 0 }
 0x354   :  { %v1382_v10 = vmul.f32 1.442695, %v1355_v42 }
 0x358   :  { %v4192_v1 = vpop.eup %3591 }
 0x359   :  { %v1419_v3 = vsel %vm1295_vm3, %v4192_v1, 0.0  ;;  %v1337_v4 = vpop.xlane.xlu0 %1336 }
 0x35a   :  { %1420 = vadd.xlane.f32.xlu0 %v1419_v3 }
 0x361   :  { %v1343_v5 = vpop.xlane.xlu0 %1342 }
 0x362   :  { %v1359_v57 = vsub.f32 %v4139_v61, %v1343_v5  ;;  %v3441_v5 = vunpack.i.h.bf16 %v4196_v25 }
 0x364   :  { %v1390_v46 = vmul.f32 1.442695, %v1359_v57 }
 0x365   :  { %v1397_v6 = vpop.xlane.xlu0 %1396 }
 0x366   :  { %3593 = vrcp.f32 %v1397_v6 }
 0x36d   :  { %v1316_v8 = vpop.xlane.xlu1 %1315 }
 0x36e   :  { %v1350_v16 = vsub.f32 %v4106_v9, %v1316_v8  ;;  %v1631_v9 = vsel %vm1491_vm2, %v545_v22, 0  ;;  %v3440_v22 = vunpack.i.l.bf16 %v4196_v25 }
 0x370   :  { %v1372_v17 = vmul.f32 1.442695, %v1350_v16  ;;  %v3594_v19 = vpop.eup %3593  ;;  %v547_v16 = vpack.c.bf16 %v3441_v5, %v3441_v5 }
 0x371   :  { %v1322_v18 = vpop.xlane.xlu1 %1321  ;;  %v1443_v21 = vmul.f32 %v3594_v19, %v4143_v7 }
 0x372   :  { %3595 = vpow2.f32 %v1372_v17  ;;  %v1352_v20 = vsub.f32 %v4112_v23, %v1322_v18  ;;  %v1357_v23 = vsub.f32 %v4133_v51, %v1337_v4  ;;  %v1723_v19 = vsel %vm1491_vm2, %v547_v16, 0 }
 0x373   :  { %v1473_v30 = vpack.c.bf16 %v1443_v21, %v1443_v21 }
 0x374   :  { %v1376_v28 = vmul.f32 1.442695, %v1352_v20 }
 0x375   :  { %v1328_v29 = vpop.xlane.xlu1 %1327  ;;  %3253 = vmatmul.mubr.msk.bf16.vlgmr.msra.gmra.mrb[44].mxu0 %vm1295_vm3, %v1473_v30 }
 0x376   :  { %3597 = vpow2.f32 %v1376_v28  ;;  %v1354_v35 = vsub.f32 %v4124_v11, %v1328_v29  ;;  %3263 = vmatpush3.bf16.msra.mxu0 %v1631_v9  ;;  %3264 = vmatprep.mubr.msk.bf16.mxu0 %vm3814_vm0, %v3813_v31  ;;  %v1386_v11 = vmul.f32 1.442695, %v1357_v23  ;;  %v546_v28 = vpack.c.bf16 %v3440_v22, %v3440_v22 }
 0x377   :  { %3274 = vmatprep.subr.bf16.mxu0 %v3813_v31 }
 0x378   :  { %v1380_v27 = vmul.f32 1.442695, %v1354_v35  ;;  %v1677_v30 = vsel %vm1491_vm2, %v546_v28, 0 }
 0x379   :  { %v1334_v15 = vpop.xlane.xlu1 %1333 }
 0x37a   :  { %3599 = vpow2.f32 %v1380_v27  ;;  %v1356_v4 = vsub.f32 %v4131_v50, %v1334_v15 }
 0x37b   :  { %3601 = vpow2.f32 %v1382_v10 }
 0x37c   :  { %v4211_v13 = vpop.eup %3595  ;;  %3603 = vpow2.f32 %v1386_v11  ;;  %v1384_v6 = vmul.f32 1.442695, %v1356_v4 }
 0x37d   :  { %v1340_v7 = vpop.xlane.xlu1 %1339  ;;  %v1410_v32 = vsel %vm1295_vm3, %v4211_v13, 0.0 }
 0x37e   :  { %v1358_v38 = vsub.f32 %v4137_v60, %v1340_v7  ;;  %1411 = vadd.xlane.f32.xlu1 %v1410_v32 }
 0x380   :  { %v4216_v51 = vpop.eup %3597  ;;  %v1388_v40 = vmul.f32 1.442695, %v1358_v38 }
 0x381   :  { %v1394_v43 = vpop.xlane.xlu1 %1393  ;;  %v1416_v44 = vsel %vm1295_vm3, %v4216_v51, 0.0 }
 0x382   :  { %1417 = vadd.xlane.f32.xlu1 %v1416_v44  ;;  %3605 = vrcp.f32 %v1394_v43 }
 0x383   :  { %3607 = vpow2.f32 %v1388_v40 }
 0x384   :  { %v4221_v45 = vpop.eup %3599  ;;  %3609 = vpow2.f32 %v1390_v46 }
 0x385   :  { %v1422_v60 = vsel %vm1295_vm3, %v4221_v45, 0.0  ;;  %v4225_v49 = vpop.eup %3601  ;;  %v4261_v50 = vpop.permute.xlu1 %3448 }
 0x386   :  { %1423 = vadd.xlane.f32.xlu0 %v1422_v60  ;;  %v1425_v61 = vsel %vm1295_vm3, %v4225_v49, 0.0  ;;  %v4229_v52 = vpop.eup %3603  ;;  %v3451_v43 = vunpack.i.h.bf16 %v4261_v50 }
 0x387   :  { %v1431_v53 = vsel %vm1295_vm3, %v4229_v52, 0.0 }
 0x38a   :  { %1426 = vadd.xlane.f32.xlu0 %v1425_v61 }
 0x38c   :  { %v3606_v48 = vpop.eup %3605 }
 0x38d   :  { %v4233_v56 = vpop.eup %3607  ;;  %v1441_v62 = vmul.f32 %v3606_v48, %v4160_v26  ;;  %v3444_v26 = vpop.permute.xlu0 %3443 }
 0x38e   :  { %1432 = vadd.xlane.f32.xlu0 %v1431_v53  ;;  %v1434_v59 = vsel %vm1295_vm3, %v4233_v56, 0.0  ;;  %v4240_v47 = vpop.eup %3609  ;;  %v3445_v9 = vunpack.i.l.bf16 %v3444_v26 }
 0x38f   :  { %v1472_v58 = vpack.c.bf16 %v1441_v62, %v1441_v62  ;;  %v1437_v14 = vsel %vm1295_vm3, %v4240_v47, 0.0 }
 0x390   :  { %v548_v15 = vpack.c.bf16 %v3445_v9, %v3445_v9 }
 0x391   :  { %3247 = vmatmul.mubr.msk.bf16.vlgmr.msra.gmra.mrb[32].mxu1 %vm1295_vm3, %v1472_v58  ;;  %v3450_v58 = vunpack.i.l.bf16 %v4261_v50 }
 0x392   :  { %1435 = vadd.xlane.f32.xlu0 %v1434_v59  ;;  %3257 = vmatpush3.bf16.msra.mxu1 %v1585_v2  ;;  %v1769_v57 = vsel %vm1491_vm2, %v548_v15, 0 }
 0x393   :  { %3453 = vrot.lane.b32.xlu1 %v4080_v41, %s3809_s0  ;;  %3258 = vmatprep.mubr.msk.bf16.mxu1 %vm3814_vm0, %v3813_v31  ;;  %v550_v4 = vpack.c.bf16 %v3450_v58, %v3450_v58 }
 0x394   :  { %3268 = vmatprep.subr.bf16.mxu1 %v3813_v31 }
 0x396   :  { %1438 = vadd.xlane.f32.xlu0 %v1437_v14 }
 0x39a   :  { %v1403_v3 = vpop.xlane.xlu0 %1402 }
 0x39b   :  { %3611 = vrcp.f32 %v1403_v3 }
 0x39c   :  { %3613 = vpow2.f32 %v1384_v6 }
 0x3a5   :  { %v3612_v8 = vpop.eup %3611 }
 0x3a6   :  { %v1447_v17 = vmul.f32 %v3612_v8, %v4167_v37  ;;  %v4263_v20 = vpop.eup %3613 }
 0x3a7   :  { %v1428_v21 = vsel %vm1295_vm3, %v4263_v20, 0.0 }
 0x3a8   :  { %v1475_v18 = vpack.c.bf16 %v1447_v17, %v1447_v17 }
 0x3aa   :  { %3265 = vmatmul.mubr.msk.bf16.vlgmr.msra.gmra.mrb[48].mxu0 %vm1295_vm3, %v1475_v18 }
 0x3ab   :  { %3275 = vmatpush3.bf16.msra.mxu0 %v1723_v19  ;;  %3276 = vmatprep.mubr.msk.bf16.mxu0 %vm3814_vm0, %v3813_v31  ;;  %v1861_v19 = vsel %vm1491_vm2, %v550_v4, 0 }
 0x3ac   :  { %3458 = vrot.lane.b32.xlu0 %v4116_v24, %s3816_s25  ;;  %3286 = vmatprep.subr.bf16.mxu0 %v3813_v31 }
 0x3b6   :  { %v1400_v37 = vpop.xlane.xlu1 %1399 }
 0x3b7   :  { %3615 = vrcp.f32 %v1400_v37  ;;  %1429 = vadd.xlane.f32.xlu1 %v1428_v21 }
 0x3c1   :  { %v3616_v42 = vpop.eup %3615 }
 0x3c2   :  { %v1445_v24 = vmul.f32 %v3616_v42, %v4172_v39  ;;  %v3446_v39 = vunpack.i.h.bf16 %v3444_v26 }
 0x3c4   :  { %v1474_v29 = vpack.c.bf16 %v1445_v24, %v1445_v24  ;;  %v549_v7 = vpack.c.bf16 %v3446_v39, %v3446_v39 }
 0x3c6   :  { %3259 = vmatmul.mubr.msk.bf16.vlgmr.msra.gmra.mrb[36].mxu1 %vm1295_vm3, %v1474_v29  ;;  %v1815_v40 = vsel %vm1491_vm2, %v549_v7, 0 }
 0x3c7   :  { %3269 = vmatpush3.bf16.msra.mxu1 %v1677_v30  ;;  %3270 = vmatprep.mubr.msk.bf16.mxu1 %vm3814_vm0, %v3813_v31 }
 0x3c8   :  { %3463 = vrot.lane.b32.xlu1 %v4080_v41, %s3816_s25  ;;  %3280 = vmatprep.subr.bf16.mxu1 %v3813_v31 }
 0x3d6   :  { %v1406_v35 = vpop.xlane.xlu1 %1405 }
 0x3d7   :  { %3617 = vrcp.f32 %v1406_v35  ;;  %v1409_v25 = vpop.xlane.xlu0 %1408 }
 0x3d8   :  { %3619 = vrcp.f32 %v1409_v25 }
 0x3df   :  { %v1415_v10 = vpop.xlane.xlu0 %1414 }
 0x3e0   :  { %3621 = vrcp.f32 %v1415_v10 }
 0x3e1   :  { %v3618_v23 = vpop.eup %3617 }
 0x3e2   :  { %v3620_v27 = vpop.eup %3619  ;;  %v1449_v11 = vmul.f32 %v3618_v23, %v4179_v54 }
 0x3e3   :  { %v1451_v32 = vmul.f32 %v3620_v27, %v4181_v55  ;;  %v551_v55 = vpack.c.bf16 %v3451_v43, %v3451_v43 }
 0x3e4   :  { %v1476_v38 = vpack.c.bf16 %v1449_v11, %v1449_v11 }
 0x3e5   :  { %v1477_v41 = vpack.c.bf16 %v1451_v32, %v1451_v32  ;;  %v1907_v61 = vsel %vm1491_vm2, %v551_v55, 0 }
 0x3e6   :  { %3271 = vmatmul.mubr.msk.bf16.vlgmr.msra.gmra.mrb[40].mxu1 %vm1295_vm3, %v1476_v38 }
 0x3e7   :  { %3277 = vmatmul.mubr.msk.bf16.vlgmr.msra.gmra.mrb[52].mxu0 %vm1295_vm3, %v1477_v41  ;;  %3281 = vmatpush3.bf16.msra.mxu1 %v1769_v57  ;;  %v1421_v44 = vpop.xlane.xlu0 %1420 }
 0x3e8   :  { %3287 = vmatpush3.bf16.msra.mxu0 %v1815_v40  ;;  %3288 = vmatprep.mubr.msk.bf16.mxu0 %vm3814_vm0, %v3813_v31  ;;  %3623 = vrcp.f32 %v1421_v44 }
 0x3e9   :  { %3298 = vmatprep.subr.bf16.mxu0 %v3813_v31  ;;  %3282 = vmatprep.mubr.msk.bf16.mxu1 %vm3814_vm0, %v3813_v31 }
 0x3ea   :  { %3292 = vmatprep.subr.bf16.mxu1 %v3813_v31  ;;  %v3622_v54 = vpop.eup %3621 }
 0x3eb   :  { %v1455_v46 = vmul.f32 %v3622_v54, %v4188_v12 }
 0x3ed   :  { %v1479_v60 = vpack.c.bf16 %v1455_v46, %v1455_v46 }
 0x3ef   :  { %3289 = vmatmul.mubr.msk.bf16.vlgmr.msra.gmra.mrb[56].mxu0 %vm1295_vm3, %v1479_v60 }
 0x3f0   :  { %3299 = vmatpush3.bf16.msra.mxu0 %v1907_v61  ;;  %3300 = vmatprep.mubr.msk.bf16.mxu0 %vm3814_vm0, %v3813_v31 }
 0x3f1   :  { %3310 = vmatprep.subr.bf16.mxu0 %v3813_v31 }
 0x3f2   :  { %v3624_v48 = vpop.eup %3623 }
 0x3f3   :  { %v1459_v53 = vmul.f32 %v3624_v48, %v4192_v1 }
 0x3f5   :  { %v1481_v62 = vpack.c.bf16 %v1459_v53, %v1459_v53 }
 0x3f7   :  { %3301 = vmatmul.mubr.msk.bf16.vlgmr.msra.gmra.mrb[60].mxu0 %vm1295_vm3, %v1481_v62 }
 0x3f8   :  { %3312 = vmatprep.mubr.msk.bf16.mxu0 %vm3814_vm0, %v3813_v31 }
 0x40b   :  { %v1412_v12 = vpop.xlane.xlu1 %1411 }
 0x40c   :  { %3625 = vrcp.f32 %v1412_v12 }
 0x40f   :  { %v1418_v63 = vpop.xlane.xlu1 %1417 }
 0x410   :  { %3627 = vrcp.f32 %v1418_v63 }
 0x413   :  { %v3454_v59 = vpop.permute.xlu1 %3453  ;;  %v1424_v2 = vpop.xlane.xlu0 %1423 }
 0x414   :  { %v3456_v14 = vunpack.i.h.bf16 %v3454_v59  ;;  %3629 = vrcp.f32 %v1424_v2  ;;  %v3455_v17 = vunpack.i.l.bf16 %v3454_v59 }
 0x416   :  { %v3626_v26 = vpop.eup %3625  ;;  %v553_v3 = vpack.c.bf16 %v3456_v14, %v3456_v14  ;;  %v552_v50 = vpack.c.bf16 %v3455_v17, %v3455_v17 }
 0x417   :  { %v1453_v1 = vmul.f32 %v3626_v26, %v4211_v13  ;;  %v1427_v5 = vpop.xlane.xlu0 %1426 }
 0x418   :  { %3631 = vrcp.f32 %v1427_v5  ;;  %v1999_v6 = vsel %vm1491_vm2, %v553_v3, 0  ;;  %v1953_v29 = vsel %vm1491_vm2, %v552_v50, 0 }
 0x419   :  { %3311 = vmatpush3.bf16.msra.mxu0 %v1999_v6  ;;  %v1478_v8 = vpack.c.bf16 %v1453_v1, %v1453_v1 }
 0x41a   :  { %v3628_v16 = vpop.eup %3627  ;;  %3322 = vmatprep.subr.bf16.mxu0 %v3813_v31 }
 0x41b   :  { %v1433_v18 = vpop.xlane.xlu0 %1432  ;;  %3283 = vmatmul.mubr.msk.bf16.vlgmr.msra.gmra.mrb[44].mxu1 %vm1295_vm3, %v1478_v8  ;;  %v1457_v13 = vmul.f32 %v3628_v16, %v4216_v51 }
 0x41c   :  { %3293 = vmatpush3.bf16.msra.mxu1 %v1861_v19  ;;  %3294 = vmatprep.mubr.msk.bf16.mxu1 %vm3814_vm0, %v3813_v31  ;;  %3633 = vrcp.f32 %v1433_v18 }
 0x41d   :  { %3304 = vmatprep.subr.bf16.mxu1 %v3813_v31  ;;  %v1480_v22 = vpack.c.bf16 %v1457_v13, %v1457_v13 }
 0x41e   :  { %v3630_v21 = vpop.eup %3629 }
 0x41f   :  { %v1436_v37 = vpop.xlane.xlu0 %1435  ;;  %v1461_v51 = vmul.f32 %v3630_v21, %v4221_v45 }
 0x421   :  { %v1482_v39 = vpack.c.bf16 %v1461_v51, %v1461_v51 }
 0x422   :  { %v3632_v42 = vpop.eup %3631 }
 0x423   :  { %v1463_v28 = vmul.f32 %v3632_v42, %v4225_v49  ;;  %v1439_v24 = vpop.xlane.xlu0 %1438  ;;  %3295 = vmatmul.mubr.msk.bf16.vlgmr.msra.gmra.mrb[48].mxu1 %vm1295_vm3, %v1480_v22 }
 0x424   :  { %3305 = vmatpush3.bf16.msra.mxu1 %v1953_v29  ;;  %3306 = vmatprep.mubr.msk.bf16.mxu1 %vm3814_vm0, %v3813_v31  ;;  %3635 = vrcp.f32 %v1439_v24 }
 0x425   :  { %v1483_v30 = vpack.c.bf16 %v1463_v28, %v1463_v28  ;;  %3316 = vmatprep.subr.bf16.mxu1 %v3813_v31 }
 0x426   :  { %v3634_v35 = vpop.eup %3633 }
 0x427   :  { %v3459_v25 = vpop.permute.xlu0 %3458  ;;  %3313 = vmatmul.mubr.msk.bf16.vlgmr.msra.gmra.mrb[64].mxu0 %vm1295_vm3, %v1483_v30  ;;  %v1467_v10 = vmul.f32 %v3634_v35, %v4229_v52 }
 0x428   :  { %v3461_v9 = vunpack.i.h.bf16 %v3459_v25  ;;  %v3460_v49 = vunpack.i.l.bf16 %v3459_v25  ;;  %3324 = vmatprep.mubr.msk.bf16.mxu0 %vm3814_vm0, %v3813_v31 }
 0x429   :  { %v1485_v11 = vpack.c.bf16 %v1467_v10, %v1467_v10 }
 0x42a   :  { %v555_v23 = vpack.c.bf16 %v3461_v9, %v3461_v9  ;;  %v554_v27 = vpack.c.bf16 %v3460_v49, %v3460_v49 }
 0x42b   :  { %3307 = vmatmul.mubr.msk.bf16.vlgmr.msra.gmra.mrb[52].mxu1 %vm1295_vm3, %v1482_v39 }
 0x42c   :  { %v2045_v45 = vsel %vm1491_vm2, %v554_v27, 0  ;;  %v2091_v15 = vsel %vm1491_vm2, %v555_v23, 0  ;;  %3318 = vmatprep.mubr.msk.bf16.mxu1 %vm3814_vm0, %v3813_v31  ;;  %v3529_v27 = vld [vmem:[#allocation7] sm:$0xff]  }
 0x42d   :  { %3317 = vmatpush3.bf16.msra.mxu1 %v2045_v45  ;;  %3323 = vmatpush3.bf16.msra.mxu0 %v2091_v15  ;;  %v3530_v45 = vld [vmem:[#allocation7 + $0x8] sm:$0xff]  }
 0x42e   :  { %3334 = vmatprep.subr.bf16.mxu0 %v3813_v31  ;;  %3328 = vmatprep.subr.bf16.mxu1 %v3813_v31  ;;  %v3636_v7 = vpop.eup %3635 }
 0x42f   :  { %v1471_v57 = vmul.f32 %v3636_v7, %v4240_v47 }
 0x430   :  { %3325 = vmatmul.mubr.msk.bf16.vlgmr.msra.gmra.mrb[68].mxu0 %vm1295_vm3, %v1485_v11 }
 0x431   :  { %3336 = vmatprep.mubr.msk.bf16.mxu0 %vm3814_vm0, %v3813_v31  ;;  %v1487_v61 = vpack.c.bf16 %v1471_v57, %v1471_v57 }
 0x444   :  { %v1430_v52 = vpop.xlane.xlu1 %1429 }
 0x445   :  { %3637 = vrcp.f32 %v1430_v52 }
 0x446   :  { %3639 = vrcp.f32 %v1436_v37 }
 0x448   :  { %v3464_v32 = vpop.permute.xlu1 %3463  ;;  %v4330_v41 = vpop.f32.mrb[44].mxu0 }
 0x449   :  { %v3466_v38 = vunpack.i.h.bf16 %v3464_v32  ;;  %v3254_v43 = vpop.f32.mrb[45].mxu0  ;;  %v3465_v44 = vunpack.i.l.bf16 %v3464_v32 }
 0x44a   :  { %v1578_v54 = vpop.f32.mrb[46].mxu0 }
 0x44b   :  { %v557_v40 = vpack.c.bf16 %v3466_v38, %v3466_v38  ;;  %v3255_v55 = vpop.f32.mrb[47].mxu0  ;;  %v556_v53 = vpack.c.bf16 %v3465_v44, %v3465_v44  ;;  %v3531_v38 = vld [vmem:[#allocation7 + $0x10] sm:$0xff]   ;;  %v3532_v54 = vld [vmem:[#allocation7 + $0x18] sm:$0xff]  }
 0x44d   :  { %v2183_v46 = vsel %vm1491_vm2, %v557_v40, 0  ;;  %v2137_v47 = vsel %vm1491_vm2, %v556_v53, 0 }
 0x44e   :  { %3335 = vmatpush3.bf16.msra.mxu0 %v2183_v46 }
 0x44f   :  { %v3638_v60 = vpop.eup %3637 }
 0x450   :  { %v1465_v48 = vmul.f32 %v3638_v60, %v4263_v20  ;;  %v3640_v12 = vpop.eup %3639 }
 0x451   :  { %3337 = vmatmul.mubr.msk.bf16.vlgmr.msra.gmra.mrb[72].mxu0 %vm1295_vm3, %v1487_v61  ;;  %v1469_v63 = vmul.f32 %v3640_v12, %v4233_v56 }
 0x452   :  { %v1484_v62 = vpack.c.bf16 %v1465_v48, %v1465_v48  ;;  %2613 = vmatprep.mubr.bf16.mxu0 %v3812_v0  ;;  %v3533_v48 = vld [vmem:[#allocation7 + $0x20] sm:$0xff]  }
 0x453   :  { %v1486_v58 = vpack.c.bf16 %v1469_v63, %v1469_v63  ;;  %v3534_v63 = vld [vmem:[#allocation7 + $0x28] sm:$0xff]  }
 0x454   :  { %3319 = vmatmul.mubr.msk.bf16.vlgmr.msra.gmra.mrb[56].mxu1 %vm1295_vm3, %v1484_v62 }
 0x455   :  { %3329 = vmatpush3.bf16.msra.mxu1 %v2137_v47  ;;  %3330 = vmatprep.mubr.msk.bf16.mxu1 %vm3814_vm0, %v3813_v31 }
 0x456   :  { %3340 = vmatprep.subr.bf16.mxu1 %v3529_v27 }
 0x45c   :  { %3331 = vmatmul.mubr.msk.bf16.vlgmr.msra.gmra.mrb[60].mxu1 %vm1295_vm3, %v1486_v58  ;;  %v3535_v58 = vld [vmem:[#allocation7 + $0x30] sm:$0xff]  }
 0x45d   :  { %3341 = vmatpush3.bf16.msra.mxu1 %v3529_v27 }
 0x45e   :  { %3342 = vmatprep.subr.bf16.mxu1 %v3530_v45 }
 0x461   :  { %3343 = vmatpush3.bf16.msra.mxu1 %v3530_v45 }
 0x462   :  { %3344 = vmatprep.subr.bf16.mxu1 %v3531_v38 }
 0x464   :  { %v4343_v20 = vpop.f32.mrb[32].mxu1 }
 0x465   :  { %v3248_v59 = vpop.f32.mrb[33].mxu1  ;;  %3345 = vmatpush3.bf16.msra.mxu1 %v3531_v38 }
 0x466   :  { %v1532_v2 = vpop.f32.mrb[34].mxu1  ;;  %3346 = vmatprep.subr.bf16.mxu1 %v3532_v54 }
 0x467   :  { %v3249_v14 = vpop.f32.mrb[35].mxu1 }
 0x469   :  { %3347 = vmatpush3.bf16.msra.mxu1 %v3532_v54 }
 0x46a   :  { %3348 = vmatprep.subr.bf16.mxu1 %v3533_v48 }
 0x46d   :  { %3349 = vmatpush3.bf16.msra.mxu1 %v3533_v48 }
 0x46e   :  { %3350 = vmatprep.subr.bf16.mxu1 %v3534_v63 }
 0x471   :  { %3351 = vmatpush3.bf16.msra.mxu1 %v3534_v63 }
 0x472   :  { %3352 = vmatprep.subr.bf16.mxu1 %v3535_v58 }
 0x475   :  { %3353 = vmatpush3.bf16.msra.mxu1 %v3535_v58 }
 0x47d   :  { %v4345_v26 = vpop.f32.mrb[48].mxu0 }
 0x47e   :  { %v3266_v3 = vpop.f32.mrb[49].mxu0 }
 0x47f   :  { %v1670_v4 = vpop.f32.mrb[50].mxu0 }
 0x480   :  { %v3267_v1 = vpop.f32.mrb[51].mxu0 }
 0x481   :  { %v3536_v1 = vld [vmem:[#allocation7 + $0x38] sm:$0xff]  }
 0x482   :  { %3354 = vmatprep.subr.bf16.mxu1 %v3536_v1 }
 0x483   :  { %3355 = vmatpush3.bf16.msra.mxu1 %v3536_v1  ;;  %v3539_v1 = vld [vmem:[#allocation8 + $0x4] ss:$8 sps:$4 sm:$0xff]  }
 0x484   :  { %2581 = vmatprep.subr.bf16.mxu0 %v3539_v1 }
 0x499   :  { %v4347_v5 = vpop.f32.mrb[36].mxu1 }
 0x49a   :  { %v3260_v6 = vpop.f32.mrb[37].mxu1 }
 0x49b   :  { %v1624_v8 = vpop.f32.mrb[38].mxu1 }
 0x49c   :  { %v3261_v31 = vpop.f32.mrb[39].mxu1 }
 0x4b9   :  { %v1713_v16 = vpop.f32.mrb[40].mxu1 }
 0x4ba   :  { %v1759_v56 = vpop.f32.mrb[52].mxu0  ;;  %v3272_v17 = vpop.f32.mrb[41].mxu1 }
 0x4bb   :  { %v3467_v18 = vpack.i.bf16 %v1759_v56, %v1713_v16  ;;  %v3278_v19 = vpop.f32.mrb[53].mxu0  ;;  %v1716_v13 = vpop.f32.mrb[42].mxu1 }
 0x4bc   :  { %v1762_v50 = vpop.f32.mrb[54].mxu0  ;;  %v3273_v37 = vpop.f32.mrb[43].mxu1 }
 0x4bd   :  { %3468 = vrot.lane.b32.xlu1 %v3467_v18, %s3816_s25  ;;  %v3279_v21 = vpop.f32.mrb[55].mxu0 }
 0x4c2   :  { %v1851_v22 = vpop.f32.mrb[56].mxu0 }
 0x4c3   :  { %v3290_v42 = vpop.f32.mrb[57].mxu0 }
 0x4c4   :  { %v1854_v28 = vpop.f32.mrb[58].mxu0 }
 0x4c5   :  { %v3291_v24 = vpop.f32.mrb[59].mxu0 }
 0x4ca   :  { %v1943_v29 = vpop.f32.mrb[60].mxu0 }
 0x4cb   :  { %v3302_v51 = vpop.f32.mrb[61].mxu0 }
 0x4cc   :  { %v1946_v30 = vpop.f32.mrb[62].mxu0 }
 0x4cd   :  { %v3303_v35 = vpop.f32.mrb[63].mxu0 }
 0x4ee   :  { %v1805_v25 = vpop.f32.mrb[44].mxu1 }
 0x4ef   :  { %v3472_v9 = vpack.i.bf16 %v1851_v22, %v1805_v25  ;;  %v3284_v49 = vpop.f32.mrb[45].mxu1 }
 0x4f0   :  { %v1808_v39 = vpop.f32.mrb[46].mxu1 }
 0x4f1   :  { %v3285_v10 = vpop.f32.mrb[47].mxu1  ;;  %3473 = vrot.lane.b32.xlu1 %v3472_v9, %s3816_s25 }
 0x4f6   :  { %v1897_v23 = vpop.f32.mrb[48].mxu1 }
 0x4f7   :  { %v3477_v15 = vpack.i.bf16 %v1943_v29, %v1897_v23  ;;  %v3296_v11 = vpop.f32.mrb[49].mxu1 }
 0x4f8   :  { %v1900_v52 = vpop.f32.mrb[50].mxu1 }
 0x4f9   :  { %v3297_v7 = vpop.f32.mrb[51].mxu1  ;;  %3478 = vrot.lane.b32.xlu1 %v3477_v15, %s3809_s0 }
 0x4fa   :  { %v2035_v32 = vpop.f32.mrb[64].mxu0 }
 0x4fb   :  { %v3314_v57 = vpop.f32.mrb[65].mxu0 }
 0x4fc   :  { %v2038_v40 = vpop.f32.mrb[66].mxu0 }
 0x4fd   :  { %v3315_v43 = vpop.f32.mrb[67].mxu0 }
 0x4fe   :  { %v1989_v44 = vpop.f32.mrb[52].mxu1 }
 0x4ff   :  { %v3482_v55 = vpack.i.bf16 %v2035_v32, %v1989_v44  ;;  %v3308_v46 = vpop.f32.mrb[53].mxu1 }
 0x500   :  { %v1992_v60 = vpop.f32.mrb[54].mxu1 }
 0x501   :  { %v3309_v61 = vpop.f32.mrb[55].mxu1  ;;  %3483 = vrot.lane.b32.xlu1 %v3482_v55, %s3809_s0  ;;  %v2970_v55 = vld [vmem:[%s4455_s7] ss:$0 sm:$0xff] }
 0x503   :  { %v2127_v53 = vpop.f32.mrb[68].mxu0 }
 0x504   :  { %v3326_v62 = vpop.f32.mrb[69].mxu0 }
 0x505   :  { %v2130_v12 = vpop.f32.mrb[70].mxu0  ;;  %v3657_v62 = vld [vmem:[#allocation2] sm:$0xff] }
 0x506   :  { %v3327_v47 = vpop.f32.mrb[71].mxu0 }
 0x507   :  { %v3658_v47 = vld [vmem:[#allocation2 + $0x8] sm:$0xff] }
 0x524   :  { %v2219_v59 = vpop.f32.mrb[72].mxu0 }
 0x525   :  { %v3338_v2 = vpop.f32.mrb[73].mxu0 }
 0x526   :  { %v2222_v14 = vpop.f32.mrb[74].mxu0 }
 0x527   :  { %v2081_v3 = vpop.f32.mrb[56].mxu1  ;;  %v3339_v4 = vpop.f32.mrb[75].mxu0  ;;  %v3660_v14 = vld [vmem:[#allocation2 + $0x18] sm:$0xff] }
 0x528   :  { %v3487_v6 = vpack.i.bf16 %v2127_v53, %v2081_v3  ;;  %v3320_v8 = vpop.f32.mrb[57].mxu1  ;;  %v3537_v4 = vld [vmem:[#allocation8] ss:$8 sps:$4 sm:$0xff]  }
 0x529   :  { %v2084_v31 = vpop.f32.mrb[58].mxu1  ;;  %2582 = vmatpush1.bf16.msra.mxu0 %v3537_v4  ;;  %v3540_v8 = vld [vmem:[#allocation8 + $0x10] ss:$8 sps:$4 sm:$0xff]  }
 0x52a   :  { %v3321_v16 = vpop.f32.mrb[59].mxu1  ;;  %3488 = vrot.lane.b32.xlu0 %v3487_v6, %s3815_s2  ;;  %v3542_v6 = vld [vmem:[#allocation8 + $0x14] ss:$8 sps:$4 sm:$0xff]  }
 0x52b   :  { %2583 = vmatprep.subr.bf16.mxu0 %v3542_v6  ;;  %v2980_v6 = vld [vmem:[%s4455_s7 + $0x2] ss:$0 sm:$0xff] }
 0x52d   :  { %2584 = vmatpush1.bf16.msra.mxu0 %v3540_v8 }
 0x52f   :  { %v2173_v56 = vpop.f32.mrb[60].mxu1  ;;  %v3469_v50 = vpop.permute.xlu1 %3468 }
 0x530   :  { %v3492_v17 = vpack.i.bf16 %v2219_v59, %v2173_v56  ;;  %v3332_v18 = vpop.f32.mrb[61].mxu1  ;;  %v3471_v22 = vunpack.i.h.bf16 %v3469_v50  ;;  %v3470_v42 = vunpack.i.l.bf16 %v3469_v50  ;;  %v3659_v59 = vld [vmem:[#allocation2 + $0x10] sm:$0xff] }
 0x531   :  { %v2176_v19 = vpop.f32.mrb[62].mxu1 }
 0x532   :  { %v3333_v13 = vpop.f32.mrb[63].mxu1  ;;  %3493 = vrot.lane.b32.xlu1 %v3492_v17, %s3815_s2  ;;  %v2274_v51 = vsel %vm558_vm1, %v4330_v41, %v3471_v22  ;;  %v2273_v30 = vsel %vm558_vm1, %v4343_v20, %v3470_v42 }
 0x563   :  { %v3474_v37 = vpop.permute.xlu1 %3473 }
 0x564   :  { %v3476_v45 = vunpack.i.h.bf16 %v3474_v37  ;;  %v3475_v15 = vunpack.i.l.bf16 %v3474_v37 }
 0x566   :  { %v2276_v20 = vsel %vm558_vm1, %v4345_v26, %v3476_v45  ;;  %v2275_v7 = vsel %vm558_vm1, %v4347_v5, %v3475_v15  ;;  %v3557_v45 = vld [vmem:[#allocation8 + $0x64] ss:$8 sps:$4 sm:$0xff]   ;;  %v3560_v15 = vld [vmem:[#allocation8 + $0x74] ss:$8 sps:$4 sm:$0xff]  }
 0x56b   :  { %v3479_v21 = vpop.permute.xlu1 %3478 }
 0x56c   :  { %v3481_v28 = vunpack.i.h.bf16 %v3479_v21  ;;  %v3480_v24 = vunpack.i.l.bf16 %v3479_v21 }
 0x56e   :  { %v2279_v9 = vsel %vm2277_vm4, %v2274_v51, %v3481_v28  ;;  %v2278_v49 = vsel %vm2277_vm4, %v2273_v30, %v3480_v24  ;;  %v3545_v30 = vld [vmem:[#allocation8 + $0x24] ss:$8 sps:$4 sm:$0xff]  }
 0x56f   :  { %2585 = vmatprep.subr.bf16.mxu0 %v3545_v30 }
 0x573   :  { %v3484_v39 = vpop.permute.xlu1 %3483 }
 0x574   :  { %v3486_v11 = vunpack.i.h.bf16 %v3484_v39  ;;  %v3485_v52 = vunpack.i.l.bf16 %v3484_v39  ;;  %v3549_v39 = vld [vmem:[#allocation8 + $0x40] ss:$8 sps:$4 sm:$0xff]  }
 0x576   :  { %v2281_v57 = vsel %vm2277_vm4, %v2276_v20, %v3486_v11  ;;  %v2280_v40 = vsel %vm2277_vm4, %v2275_v7, %v3485_v52  ;;  %v3558_v11 = vld [vmem:[#allocation8 + $0x70] ss:$8 sps:$4 sm:$0xff]   ;;  %v3561_v52 = vld [vmem:[#allocation10 + $0x40] sm:$0xff]   ;;  %v3563_v20 = vld [vmem:[#allocation10 + $0x48] sm:$0xff]  }
 0x577   :  { %3100 = vmatprep.subr.bf16.mxu1 %v3561_v52  ;;  %v3564_v7 = vld [vmem:[#allocation10 + $0x8] sm:$0xff]  }
 0x59c   :  { %v3489_v29 = vpop.permute.xlu0 %3488 }
 0x59d   :  { %v3491_v35 = vunpack.i.h.bf16 %v3489_v29  ;;  %v3490_v25 = vunpack.i.l.bf16 %v3489_v29 }
 0x59f   :  { %v2283_v10 = vsel %vm2282_vm5, %v2278_v49, %v3490_v25  ;;  %v2284_v23 = vsel %vm2282_vm5, %v2279_v9, %v3491_v35  ;;  %v3543_v35 = vld [vmem:[#allocation8 + $0x20] ss:$8 sps:$4 sm:$0xff]   ;;  %v3548_v25 = vld [vmem:[#allocation8 + $0x34] ss:$8 sps:$4 sm:$0xff]   ;;  %v3546_v9 = vld [vmem:[#allocation8 + $0x30] ss:$8 sps:$4 sm:$0xff]  }
 0x5a0   :  { %v2287_v27 = vpack.c.bf16 %v2284_v23, %v2283_v10  ;;  %2586 = vmatpush1.bf16.msra.mxu0 %v3543_v35  ;;  %v3551_v49 = vld [vmem:[#allocation8 + $0x44] ss:$8 sps:$4 sm:$0xff]   ;;  %v3554_v10 = vld [vmem:[#allocation8 + $0x54] ss:$8 sps:$4 sm:$0xff]   ;;  %v3552_v23 = vld [vmem:[#allocation8 + $0x50] ss:$8 sps:$4 sm:$0xff]  }
 0x5a1   :  { %2587 = vmatprep.subr.bf16.mxu0 %v3548_v25 }
 0x5a2   :  { %3356 = vmatprep.mubr.bf16.mxu1 %v2287_v27  ;;  %v3555_v27 = vld [vmem:[#allocation8 + $0x60] ss:$8 sps:$4 sm:$0xff]  }
 0x5a4   :  { %v3494_v41 = vpop.permute.xlu1 %3493  ;;  %2588 = vmatpush1.bf16.msra.mxu0 %v3546_v9 }
 0x5a5   :  { %v3496_v32 = vunpack.i.h.bf16 %v3494_v41  ;;  %v3495_v38 = vunpack.i.l.bf16 %v3494_v41  ;;  %2589 = vmatprep.subr.bf16.mxu0 %v3551_v49  ;;  %v3562_v41 = vld [vmem:[#allocation10] sm:$0xff]  }
 0x5a7   :  { %v2286_v43 = vsel %vm2282_vm5, %v2281_v57, %v3496_v32  ;;  %v2285_v44 = vsel %vm2282_vm5, %v2280_v40, %v3495_v38  ;;  %v3565_v32 = vld [vmem:[#allocation10 + $0x50] sm:$0xff]   ;;  %v3567_v57 = vld [vmem:[#allocation10 + $0x58] sm:$0xff]  }
 0x5a8   :  { %v2288_v54 = vpack.c.bf16 %v2286_v43, %v2285_v44  ;;  %2590 = vmatpush1.bf16.msra.mxu0 %v3549_v39  ;;  %v3566_v38 = vld [vmem:[#allocation10 + $0x10] sm:$0xff]   ;;  %v3568_v40 = vld [vmem:[#allocation10 + $0x18] sm:$0xff]   ;;  %v3569_v43 = vld [vmem:[#allocation10 + $0x60] sm:$0xff]  }
 0x5a9   :  { %2591 = vmatprep.subr.bf16.mxu0 %v3554_v10  ;;  %v3570_v44 = vld [vmem:[#allocation10 + $0x20] sm:$0xff]  }
 0x5aa   :  { %3357 = vmatmul.mubr.bf16.vlgmr.msra.gmra.mrb[64].mxu1 %v2288_v54  ;;  %v3571_v54 = vld [vmem:[#allocation10 + $0x68] sm:$0xff]  }
 0x5ab   :  { %3101 = vmatpush3.bf16.msra.mxu1 %v3562_v41 }
 0x5ac   :  { %2592 = vmatpush1.bf16.msra.mxu0 %v3552_v23  ;;  %3102 = vmatprep.subr.bf16.mxu1 %v3563_v20 }
 0x5ad   :  { %2593 = vmatprep.subr.bf16.mxu0 %v3557_v45 }
 0x5af   :  { %3103 = vmatpush3.bf16.msra.mxu1 %v3564_v7 }
 0x5b0   :  { %2594 = vmatpush1.bf16.msra.mxu0 %v3555_v27  ;;  %3104 = vmatprep.subr.bf16.mxu1 %v3565_v32 }
 0x5b1   :  { %2595 = vmatprep.subr.bf16.mxu0 %v3560_v15 }
 0x5b3   :  { %3105 = vmatpush3.bf16.msra.mxu1 %v3566_v38 }
 0x5b4   :  { %2596 = vmatpush1.bf16.msra.mxu0 %v3558_v11  ;;  %3106 = vmatprep.subr.bf16.mxu1 %v3567_v57 }
 0x5b7   :  { %3107 = vmatpush3.bf16.msra.mxu1 %v3568_v40 }
 0x5b8   :  { %3108 = vmatprep.subr.bf16.mxu1 %v3569_v43 }
 0x5bb   :  { %3109 = vmatpush3.bf16.msra.mxu1 %v3570_v44 }
 0x5bc   :  { %3110 = vmatprep.subr.bf16.mxu1 %v3571_v54 }
 0x67d   :  { %v3358_v26 = vpop.f32.mrb[64].mxu1 }
 0x67e   :  { %v2391_v46 = vpop.f32.mrb[65].mxu1  ;;  %v2400_v48 = vadd.f32 %v3358_v26, %v2970_v55 }
 0x67f   :  { %v2392_v60 = vadd.f32 %v2970_v55, %v2391_v46  ;;  %v3359_v5 = vpop.f32.mrb[66].mxu1 }
 0x680   :  { %v2394_v61 = vpop.f32.mrb[67].mxu1  ;;  %v2403_v58 = vadd.f32 %v3359_v5, %v2970_v55  ;;  %v2408_v2 = vadd.f32 %v3659_v59, %v2400_v48  ;;  %v2979_v59 = vld [vmem:[%s4455_s7 + $0x1] ss:$0 sm:$0xff] }
 0x681   :  { %v2395_v53 = vadd.f32 %v2970_v55, %v2394_v61  ;;  %v2406_v12 = vadd.f32 %v3657_v62, %v2392_v60 }
 0x682   :  { %v2409_v3 = vadd.f32 %v3660_v14, %v2403_v58 }
 0x683   :  { %2410 = vadd.xlane.f32.xlu0 %v2406_v12  ;;  %v2407_v63 = vadd.f32 %v3658_v47, %v2395_v53 }
 0x685   :  { %2412 = vadd.xlane.f32.xlu1 %v2407_v63 }
 0x687   :  { %2414 = vadd.xlane.f32.xlu0 %v2408_v2 }
 0x68b   :  { %2416 = vadd.xlane.f32.xlu0 %v2409_v3 }
 0x710   :  { %v2411_v31 = vpop.xlane.xlu0 %2410 }
 0x711   :  { %v2419_v16 = vmul.f32 0.0078125, %v2411_v31 }
 0x712   :  { %v2413_v56 = vpop.xlane.xlu1 %2412 }
 0x713   :  { %v4374_v17 = vsub.f32 %v2406_v12, %v2419_v16  ;;  %v2420_v18 = vmul.f32 0.0078125, %v2413_v56 }
 0x714   :  { %v2415_v19 = vpop.xlane.xlu0 %2414 }
 0x715   :  { %v4376_v13 = vsub.f32 %v2407_v63, %v2420_v18  ;;  %v2421_v50 = vmul.f32 0.0078125, %v2415_v19  ;;  %v2427_v37 = vmul.f32 %v4374_v17, %v4374_v17 }
 0x717   :  { %v4380_v21 = vsub.f32 %v2408_v2, %v2421_v50  ;;  %2431 = vadd.xlane.f32.xlu1 %v2427_v37  ;;  %v2428_v22 = vmul.f32 %v4376_v13, %v4376_v13 }
 0x718   :  { %v2417_v42 = vpop.xlane.xlu0 %2416 }
 0x719   :  { %v2422_v28 = vmul.f32 0.0078125, %v2417_v42  ;;  %2433 = vadd.xlane.f32.xlu0 %v2428_v22  ;;  %v2429_v24 = vmul.f32 %v4380_v21, %v4380_v21 }
 0x71b   :  { %v4386_v29 = vsub.f32 %v2409_v3, %v2422_v28  ;;  %2435 = vadd.xlane.f32.xlu1 %v2429_v24  ;;  %v3573_v28 = vld [vmem:[#allocation10 + $0x70] sm:$0xff]  }
 0x71c   :  { %v3574_v24 = vld [vmem:[#allocation10 + $0x30] sm:$0xff]  }
 0x71d   :  { %v2430_v51 = vmul.f32 %v4386_v29, %v4386_v29 }
 0x71f   :  { %2437 = vadd.xlane.f32.xlu0 %v2430_v51  ;;  %v3576_v51 = vld [vmem:[#allocation10 + $0x38] sm:$0xff]  }
 0x7a4   :  { %v2432_v55 = vpop.xlane.xlu1 %2431 }
 0x7a5   :  { %v2439_v26 = vmul.f32 0.0078125, %v2432_v55 }
 0x7a6   :  { %v2434_v46 = vpop.xlane.xlu0 %2433 }
 0x7a7   :  { %v2443_v60 = vadd.f32 1e-05, %v2439_v26  ;;  %v2440_v5 = vmul.f32 0.0078125, %v2434_v46 }
 0x7a8   :  { %v2436_v61 = vpop.xlane.xlu1 %2435 }
 0x7a9   :  { %3641 = vrsqrt.f32 %v2443_v60  ;;  %v2444_v48 = vadd.f32 1e-05, %v2440_v5  ;;  %v2441_v53 = vmul.f32 0.0078125, %v2436_v61  ;;  %v2997_v61 = vld [vmem:[%s4455_s7 + $0x3] ss:$0 sm:$0xff] }
 0x7ab   :  { %3643 = vrsqrt.f32 %v2444_v48  ;;  %v2445_v62 = vadd.f32 1e-05, %v2441_v53 }
 0x7ac   :  { %v2438_v12 = vpop.xlane.xlu0 %2437 }
 0x7ad   :  { %3645 = vrsqrt.f32 %v2445_v62  ;;  %v2442_v47 = vmul.f32 0.0078125, %v2438_v12 }
 0x7af   :  { %v2446_v63 = vadd.f32 1e-05, %v2442_v47 }
 0x7b1   :  { %3647 = vrsqrt.f32 %v2446_v63 }
 0x7b3   :  { %v3642_v58 = vpop.eup %3641 }
 0x7b4   :  { %v2451_v2 = vmul.f32 %v3642_v58, %v4374_v17 }
 0x7b5   :  { %v3644_v14 = vpop.eup %3643 }
 0x7b6   :  { %v2452_v3 = vmul.f32 %v3644_v14, %v4376_v13  ;;  %v2459_v4 = vmul.f32 %v2979_v59, %v2451_v2 }
 0x7b7   :  { %v3646_v1 = vpop.eup %3645 }
 0x7b8   :  { %v2460_v8 = vmul.f32 %v2979_v59, %v2452_v3  ;;  %v4398_v31 = vadd.f32 %v2980_v6, %v2459_v4  ;;  %v2453_v56 = vmul.f32 %v3646_v1, %v4380_v21  ;;  %v3572_v21 = vld [vmem:[#allocation10 + $0x28] sm:$0xff]  }
 0x7b9   :  { %3111 = vmatpush3.bf16.msra.mxu1 %v3572_v21 }
 0x7ba   :  { %v4400_v16 = vadd.f32 %v2980_v6, %v2460_v8  ;;  %v2461_v13 = vmul.f32 %v2979_v59, %v2453_v56  ;;  %3112 = vmatprep.subr.bf16.mxu1 %v3573_v28 }
 0x7bb   :  { %v3648_v18 = vpop.eup %3647 }
 0x7bc   :  { %v2471_v17 = vpack.c.bf16 %v4400_v16, %v4398_v31  ;;  %v2454_v19 = vmul.f32 %v3648_v18, %v4386_v29  ;;  %v4409_v22 = vadd.f32 %v2980_v6, %v2461_v13  ;;  %v3575_v29 = vld [vmem:[#allocation10 + $0x78] sm:$0xff]  }
 0x7bd   :  { %3113 = vmatpush3.bf16.msra.mxu1 %v3574_v24 }
 0x7be   :  { %2614 = vmatmul.mubr.bf16.vlgmr.msra.gmra.mrb[76].mxu0 %v2471_v17  ;;  %v2462_v50 = vmul.f32 %v2979_v59, %v2454_v19  ;;  %3114 = vmatprep.subr.bf16.mxu1 %v3575_v29 }
 0x7bf   :  { %2623 = vmatprep.mubr.bf16.mxu0 %v3812_v0  ;;  %v2489_v0 = vld [vmem:[%s4454_s6] sm:$0x3] }
 0x7c0   :  { %v4407_v37 = vadd.f32 %v2980_v6, %v2462_v50  ;;  %v2494_v30 = vrot.slane %v2489_v0, %v147_v36  ;;  %v2498_v35 = vrot.slane %v2489_v0, %v151_v34 }
 0x7c1   :  { %3115 = vmatpush3.bf16.msra.mxu1 %v3576_v51 }
 0x7c2   :  { %v2472_v42 = vpack.c.bf16 %v4407_v37, %v4409_v22 }
 0x7c6   :  { %2624 = vmatmul.mubr.bf16.gmra.mrb[80].mxu0 %v2472_v42 }
 0x891   :  { %v2615_v25 = vpop.f32.mrb[76].mxu0 }
 0x892   :  { %v2616_v9 = vadd.f32 %v2615_v25, %v2494_v30  ;;  %v2617_v49 = vpop.f32.mrb[77].mxu0 }
 0x893   :  { %v2618_v39 = vadd.f32 %v2617_v49, %v2498_v35  ;;  %v2619_v10 = vpop.f32.mrb[78].mxu0 }
 0x894   :  { %v2620_v23 = vadd.f32 %v2619_v10, %v2494_v30  ;;  %v2621_v27 = vpop.f32.mrb[79].mxu0  ;;  %v2634_v15 = vmax.f32 %v2616_v9, 0.0 }
 0x895   :  { %v2622_v45 = vadd.f32 %v2621_v27, %v2498_v35  ;;  %v2635_v52 = vmax.f32 %v2618_v39, 0.0 }
 0x896   :  { %v2636_v11 = vmax.f32 %v2620_v23, 0.0 }
 0x897   :  { %v2637_v41 = vmax.f32 %v2622_v45, 0.0 }
 0x898   :  { %v2642_v20 = vpack.c.bf16 %v2636_v11, %v2634_v15 }
 0x899   :  { %v2643_v7 = vpack.c.bf16 %v2637_v41, %v2635_v52  ;;  %v2625_v32 = vpop.f32.mrb[80].mxu0 }
 0x89a   :  { %v2626_v38 = vadd.f32 %v2625_v32, %v2494_v30  ;;  %v2627_v36 = vpop.f32.mrb[81].mxu0  ;;  %v3014_v32 = vld [vmem:[%s4455_s7 + $0x4] ss:$0 sm:$0xff] }
 0x89b   :  { %v2628_v57 = vadd.f32 %v2627_v36, %v2498_v35  ;;  %v2629_v33 = vpop.f32.mrb[82].mxu0  ;;  %2810 = vmatprep.mubr.bf16.mxu1 %v2643_v7 }
 0x89c   :  { %v2630_v34 = vadd.f32 %v2629_v33, %v2494_v30  ;;  %v2631_v40 = vpop.f32.mrb[83].mxu0  ;;  %2811 = vmatmul.mubr.bf16.vlgmr.msra.gmra.mrb[68].mxu1 %v2642_v20  ;;  %v2638_v44 = vmax.f32 %v2626_v38, 0.0 }
 0x89d   :  { %v2632_v43 = vadd.f32 %v2631_v40, %v2498_v35  ;;  %v2639_v55 = vmax.f32 %v2628_v57, 0.0  ;;  %v3015_v57 = vld [vmem:[%s4455_s7 + $0x5] ss:$0 sm:$0xff]  ;;  %s3771_s7 = scalar_lea.vmem %s2901_s17, 512 }
 0x89e   :  { %v2640_v54 = vmax.f32 %v2630_v34, 0.0  ;;  %p3772_p12 = scmp.ne.s32.totalorder %s2901_s17, %s3771_s7  ;;  %p3777_p0 = scmp.lt.s32.totalorder %s3771_s7, %s3771_s7 }
 0x89f   :  { %v2641_v26 = vmax.f32 %v2632_v43, 0.0 }
 0x8a0   :  { %v2644_v46 = vpack.c.bf16 %v2640_v54, %v2638_v44  ;;  %p3778_p1 = por %p3777_p0, %p3776_p13 }
 0x8a1   :  { %v2645_v60 = vpack.c.bf16 %v2641_v26, %v2639_v55 }
 0x8a2   :  { %p3779_p2 = pnand %p3778_p1, %p3772_p12 }
 0x8a3   :  { %2818 = vmatprep.mubr.bf16.mxu1 %v2645_v60 }
 0x8a4   :  { %2819 = vmatmul.mubr.bf16.gmra.mrb[72].mxu1 %v2644_v46 }
 0x96f   :  { %v3116_v5 = vpop.f32.mrb[68].mxu1 }
 0x970   :  { %v3117_v48 = vpop.f32.mrb[69].mxu1 }
 0x971   :  { %v3118_v53 = vadd.f32 %v3117_v48, %v3116_v5  ;;  %v3119_v62 = vpop.f32.mrb[70].mxu1 }
 0x972   :  { %v3120_v12 = vpop.f32.mrb[71].mxu1 }
 0x973   :  { %v2813_v47 = vadd.f32 %v3118_v53, %v2997_v61  ;;  %v3121_v63 = vadd.f32 %v3120_v12, %v3119_v62 }
 0x975   :  { %v2816_v58 = vadd.f32 %v3121_v63, %v2997_v61  ;;  %v2827_v59 = vadd.f32 %v2813_v47, %v4398_v31 }
 0x977   :  { %v3122_v2 = vpop.f32.mrb[72].mxu1  ;;  %2831 = vadd.xlane.f32.xlu1 %v2827_v59  ;;  %v2828_v14 = vadd.f32 %v2816_v58, %v4400_v16 }
 0x978   :  { %v3123_v3 = vpop.f32.mrb[73].mxu1 }
 0x979   :  { %v3124_v4 = vadd.f32 %v3123_v3, %v3122_v2  ;;  %v3125_v1 = vpop.f32.mrb[74].mxu1  ;;  %2833 = vadd.xlane.f32.xlu0 %v2828_v14 }
 0x97a   :  { %v3126_v6 = vpop.f32.mrb[75].mxu1 }
 0x97b   :  { %v2821_v8 = vadd.f32 %v3124_v4, %v2997_v61  ;;  %v3127_v56 = vadd.f32 %v3126_v6, %v3125_v1 }
 0x97d   :  { %v2824_v18 = vadd.f32 %v3127_v56, %v2997_v61  ;;  %v2829_v17 = vadd.f32 %v2821_v8, %v4409_v22 }
 0x97f   :  { %2835 = vadd.xlane.f32.xlu1 %v2829_v17  ;;  %v2830_v19 = vadd.f32 %v2824_v18, %v4407_v37 }
 0x981   :  { %2837 = vadd.xlane.f32.xlu0 %v2830_v19 }
 0xa04   :  { %v2832_v13 = vpop.xlane.xlu1 %2831 }
 0xa05   :  { %v2839_v31 = vmul.f32 0.0078125, %v2832_v13 }
 0xa06   :  { %v2834_v50 = vpop.xlane.xlu0 %2833 }
 0xa07   :  { %v2843_v42 = vsub.f32 %v2827_v59, %v2839_v31  ;;  %v2840_v21 = vmul.f32 0.0078125, %v2834_v50 }
 0xa09   :  { %v2844_v16 = vsub.f32 %v2828_v14, %v2840_v21  ;;  %v2847_v28 = vmul.f32 %v2843_v42, %v2843_v42 }
 0xa0b   :  { %2851 = vadd.xlane.f32.xlu1 %v2847_v28  ;;  %v2848_v24 = vmul.f32 %v2844_v16, %v2844_v16 }
 0xa0c   :  { %v2836_v29 = vpop.xlane.xlu1 %2835 }
 0xa0d   :  { %v2841_v51 = vmul.f32 0.0078125, %v2836_v29  ;;  %2853 = vadd.xlane.f32.xlu0 %v2848_v24 }
 0xa0e   :  { %v2838_v0 = vpop.xlane.xlu0 %2837 }
 0xa0f   :  { %v2845_v30 = vsub.f32 %v2829_v17, %v2841_v51  ;;  %v2842_v35 = vmul.f32 0.0078125, %v2838_v0 }
 0xa11   :  { %v2846_v22 = vsub.f32 %v2830_v19, %v2842_v35  ;;  %v2849_v25 = vmul.f32 %v2845_v30, %v2845_v30 }
 0xa13   :  { %2855 = vadd.xlane.f32.xlu1 %v2849_v25  ;;  %v2850_v37 = vmul.f32 %v2846_v22, %v2846_v22 }
 0xa15   :  { %2857 = vadd.xlane.f32.xlu0 %v2850_v37 }
 0xa98   :  { %v2852_v9 = vpop.xlane.xlu1 %2851 }
 0xa99   :  { %v2859_v49 = vmul.f32 0.0078125, %v2852_v9 }
 0xa9a   :  { %v2854_v39 = vpop.xlane.xlu0 %2853 }
 0xa9b   :  { %v2863_v10 = vadd.f32 1e-05, %v2859_v49  ;;  %v2860_v23 = vmul.f32 0.0078125, %v2854_v39 }
 0xa9d   :  { %3649 = vrsqrt.f32 %v2863_v10  ;;  %v2864_v27 = vadd.f32 1e-05, %v2860_v23 }
 0xa9f   :  { %3651 = vrsqrt.f32 %v2864_v27 }
 0xaa0   :  { %v2856_v45 = vpop.xlane.xlu1 %2855 }
 0xaa1   :  { %v2861_v15 = vmul.f32 0.0078125, %v2856_v45 }
 0xaa2   :  { %v2858_v11 = vpop.xlane.xlu0 %2857 }
 0xaa3   :  { %v2865_v52 = vadd.f32 1e-05, %v2861_v15  ;;  %v2862_v41 = vmul.f32 0.0078125, %v2858_v11 }
 0xaa5   :  { %3653 = vrsqrt.f32 %v2865_v52  ;;  %v2866_v20 = vadd.f32 1e-05, %v2862_v41 }
 0xaa7   :  { %v3650_v7 = vpop.eup %3649  ;;  %3655 = vrsqrt.f32 %v2866_v20 }
 0xaa8   :  { %v2871_v38 = vmul.f32 %v3650_v7, %v2843_v42 }
 0xaa9   :  { %v3652_v36 = vpop.eup %3651 }
 0xaaa   :  { %v2872_v33 = vmul.f32 %v3652_v36, %v2844_v16  ;;  %v2879_v34 = vmul.f32 %v3014_v32, %v2871_v38 }
 0xaac   :  { %v2880_v40 = vmul.f32 %v3014_v32, %v2872_v33  ;;  %v2887_v43 = vadd.f32 %v3015_v57, %v2879_v34 }
 0xaae   :  { %v2888_v44 = vadd.f32 %v3015_v57, %v2880_v40  ;;  %2891 = vst [vmem:[#allocation11] sm:$0xff] %v2887_v43 }
 0xaaf   :  { %v3654_v54 = vpop.eup %3653 }
 0xab0   :  { %v2873_v55 = vmul.f32 %v3654_v54, %v2845_v30  ;;  %2892 = vst [vmem:[#allocation11 + $0x8] sm:$0xff] %v2888_v44 }
 0xab1   :  { %v3656_v26 = vpop.eup %3655 }
 0xab2   :  { %v2874_v46 = vmul.f32 %v3656_v26, %v2846_v22  ;;  %v2881_v60 = vmul.f32 %v3014_v32, %v2873_v55 }
 0xab4   :  { %v2882_v5 = vmul.f32 %v3014_v32, %v2874_v46  ;;  %v2889_v61 = vadd.f32 %v3015_v57, %v2881_v60 }
 0xab6   :  { %v2890_v48 = vadd.f32 %v3015_v57, %v2882_v5  ;;  %2893 = vst [vmem:[#allocation11 + $0x10] sm:$0xff] %v2889_v61 }
 0xab8   :  { %2894 = vst [vmem:[#allocation11 + $0x18] sm:$0xff] %v2890_v48 }
 0xab9   :  { %3782 = shalt.err (!%p3779_p2)
}
 0xaba   :  { %s3783_s4 = scalar_lea.hbm %s4456_s8, 512 }
 0xabb   :  { %p3784_p3 = scmp.ne.s32.totalorder %s4456_s8, %s3783_s4  ;;  %p3787_p4 = scmp.lt.u32.totalorder %s3783_s4, %s4456_s8 }
 0xabd   :  { %p3789_p5 = pnand %p3787_p4, %p3784_p3 }
 0xabf   :  { %3792 = shalt.err (!%p3789_p5)
}
 0xac0   :  { %2906 = dma.vmem_to_hbm [thread:$0]  %s2901_s17, 512, %s4456_s8, [#allocation4], %s3806_s28, %s3806_s28, %s3807_s9  }
 0xac1   :  { %3799 = dma.done.wait [#allocation4], 512  }
 0xac2   :  { %3800 = vsyncadd [#allocation4], 4294966784 }
 0xac3   :  { %2910 = vsyncpa [#allocation3], 1 }
 0xac4   :  { %2911 = vsyncpa [#allocation6], 1 }
 0xac5   :  { %2912 = vsyncpa [#allocation9], 1 }
 0xac6   :  { %2913 = vsyncpa [#allocation4], 1 }

</bundles_post_ra>
